<compile_context>
chip_gen: v6e
topology: v6e:2x2x1
jax: 0.10.0
libtpu: 0.0.40
codegen_flags: <defaults>
</compile_context>

<pallas_src>
import jax
import jax.numpy as jnp
from jax.experimental import pallas as pl
from jax.experimental.pallas import tpu as pltpu


def _bottleneck_kernel(x_ref, w1_ref, s1_ref, b1_ref,
                       w2_ref, s2_ref, b2_ref,
                       w3_ref, s3_ref, b3_ref,
                       o_ref, pad_ref, col_ref):
    # Per-grid-step block = one image, NHWC.
    #   x_ref:   (H, W, Cp)     f32       w1_ref: (Cp, Pp)   bf16
    #   w2_ref:  (9*Pp, Pp)     bf16      w3_ref: (Pp, Cp)   bf16
    #   s*/b*:   (1, Pp|Cp)     f32 folded-BN scale / bias
    #   o_ref:   (H, W, Cp)     f32
    #   pad_ref: (H+2, W+2, Pp) bf16 scratch (zero-padded conv2 input)
    #   col_ref: (H*W, 9*Pp)    bf16 im2col staging buffer
    H, W, Cp = x_ref.shape
    Pp = w1_ref.shape[1]
    rows = H * W

    # Single load of the input tile, reused by conv1 and the residual add.
    x = x_ref[...]
    x2d = x.reshape(rows, Cp)

    # ---- conv1 (1x1) + bn1 + relu  (bf16 MXU inputs, f32 accumulate) -----
    y1 = jnp.dot(x2d.astype(jnp.bfloat16), w1_ref[...],
                 preferred_element_type=jnp.float32)
    y1 = jnp.maximum(y1 * s1_ref[...] + b1_ref[...], 0.0)

    # ---- conv2 (3x3, pad 1, stride 1) + bn2 + relu -----------------------
    # Zero only the four halo strips (every grid step, so stale scratch from
    # the previous image can never leak into boundary taps), write the
    # interior once, build the im2col buffer, and do ONE deep matmul.
    pad_ref[0:1, :, :] = jnp.zeros((1, W + 2, Pp), jnp.bfloat16)
    pad_ref[H + 1:H + 2, :, :] = jnp.zeros((1, W + 2, Pp), jnp.bfloat16)
    pad_ref[:, 0:1, :] = jnp.zeros((H + 2, 1, Pp), jnp.bfloat16)
    pad_ref[:, W + 1:W + 2, :] = jnp.zeros((H + 2, 1, Pp), jnp.bfloat16)
    pad_ref[1:H + 1, 1:W + 1, :] = y1.reshape(H, W, Pp).astype(jnp.bfloat16)

    for k in range(9):                       # statically unrolled
        dy, dx = k // 3, k % 3
        col_ref[:, k * Pp:(k + 1) * Pp] = (
            pad_ref[dy:dy + H, dx:dx + W, :].reshape(rows, Pp))

    y2 = jnp.dot(col_ref[...], w2_ref[...], preferred_element_type=jnp.float32)
    y2 = jnp.maximum(y2 * s2_ref[...] + b2_ref[...], 0.0)

    # ---- conv3 (1x1) + bn3 ------------------------------------------------
    y3 = jnp.dot(y2.astype(jnp.bfloat16), w3_ref[...],
                 preferred_element_type=jnp.float32)
    y3 = y3 * s3_ref[...] + b3_ref[...]

    # ---- residual add + relu ----------------------------------------------
    o_ref[...] = jnp.maximum(y3 + x2d, 0.0).reshape(H, W, Cp)


def _round_up(v, m):
    return (v + m - 1) // m * m


def _pad_axis(a, axis, new_size):
    pad = [(0, 0)] * a.ndim
    pad[axis] = (0, new_size - a.shape[axis])
    return jnp.pad(a, pad)


@jax.jit
def bottleneck_forward(x_nchw, w1, s1, b1, w2, s2, b2, w3, s3, b3):
    """NCHW in / NCHW out (PyTorch layout). Internally NHWC, lane-padded."""
    N, C, H, W = x_nchw.shape
    P = w1.shape[1]
    assert w3.shape[1] == C, "residual path requires Cin == Cout (no downsample)"

    Cp = _round_up(C, 128)      # lane-dense input/output channels
    Pp = _round_up(P, 128)      # lane-dense bottleneck width

    # NCHW -> NHWC; zero-pad channels. Zero weights / zero scale / zero bias
    # on padded channels keep the math exactly equivalent.
    x = jnp.transpose(x_nchw, (0, 2, 3, 1)).astype(jnp.float32)
    x = _pad_axis(x, 3, Cp)

    bf = jnp.bfloat16
    w1p = _pad_axis(_pad_axis(w1, 0, Cp), 1, Pp).astype(bf)            # (Cp, Pp)
    w2p = _pad_axis(_pad_axis(w2, 1, Pp), 2, Pp).astype(bf)            # (9, Pp, Pp)
    w2p = w2p.reshape(9 * Pp, Pp)                                      # (9*Pp, Pp)
    w3p = _pad_axis(_pad_axis(w3, 0, Pp), 1, Cp).astype(bf)            # (Pp, Cp)
    s1p, b1p = _pad_axis(s1, 1, Pp), _pad_axis(b1, 1, Pp)
    s2p, b2p = _pad_axis(s2, 1, Pp), _pad_axis(b2, 1, Pp)
    s3p, b3p = _pad_axis(s3, 1, Cp), _pad_axis(b3, 1, Cp)

    rows = H * W
    flops = 2 * N * rows * (Cp * Pp + 9 * Pp * Pp + Pp * Cp)
    bytes_accessed = (2 * N * rows * Cp) * 4 \
        + (w1p.size + w2p.size + w3p.size) * 2 \
        + (s1p.size + b1p.size + s2p.size + b2p.size + s3p.size + b3p.size) * 4

    # One image per grid step; N dim squeezed out of the kernel view.
    img_spec = pl.BlockSpec((None, H, W, Cp), lambda n: (n, 0, 0, 0))

    def const_spec(shape):
        # Constant block index -> fetched once, resident across grid steps.
        return pl.BlockSpec(shape, lambda n, _s=len(shape): (0,) * _s)

    out = pl.pallas_call(
        _bottleneck_kernel,
        out_shape=jax.ShapeDtypeStruct((N, H, W, Cp), jnp.float32),
        grid=(N,),
        in_specs=[
            img_spec,
            const_spec((Cp, Pp)), const_spec((1, Pp)), const_spec((1, Pp)),
            const_spec((9 * Pp, Pp)), const_spec((1, Pp)), const_spec((1, Pp)),
            const_spec((Pp, Cp)), const_spec((1, Cp)), const_spec((1, Cp)),
        ],
        out_specs=img_spec,
        scratch_shapes=[
            pltpu.VMEM((H + 2, W + 2, Pp), jnp.bfloat16),   # padded conv2 input
            pltpu.VMEM((rows, 9 * Pp), jnp.bfloat16),       # im2col staging
        ],
        compiler_params=pltpu.CompilerParams(
            # "parallel": v7x's two TensorCores split the batch grid
            # (no-op on single-TC v5e/v6e).
            dimension_semantics=("parallel",),
            # 48 MiB: above the 32 MiB scoped default, within v7x's 64 MiB
            # physical VMEM (v5e/v6e have 128 MiB so it is always safe).
            vmem_limit_bytes=48 * 1024 * 1024,
        ),
        cost_estimate=pl.CostEstimate(
            flops=int(flops), transcendentals=0,
            bytes_accessed=int(bytes_accessed)),
    )(x, w1p, s1p, b1p, w2p, s2p, b2p, w3p, s3p, b3p)

    # Drop channel padding, NHWC -> NCHW.
    return jnp.transpose(out[..., :C], (0, 3, 1, 2))


def _fold_bn(gamma, beta, running_mean, running_var, eps=1e-5):
    scale = gamma / jnp.sqrt(running_var + eps)
    bias = beta - running_mean * scale
    return scale[None, :], bias[None, :]


def _reference_forward(x_nchw, w1, s1, b1, w2, s2, b2, w3, s3, b3):
    # Pure-JAX reference with matching bf16-at-MXU numerics.
    bf = jnp.bfloat16
    x = jnp.transpose(x_nchw, (0, 2, 3, 1)).astype(jnp.float32)
    N, H, W, C = x.shape

    def mm(a, w):
        return jnp.einsum('nhwc,co->nhwo', a.astype(bf), w.astype(bf),
                          preferred_element_type=jnp.float32)

    y1 = jnp.maximum(mm(x, w1) * s1 + b1, 0.0)
    yp = jnp.pad(y1, ((0, 0), (1, 1), (1, 1), (0, 0)))
    acc = jnp.zeros_like(y1)
    for k in range(9):
        dy, dx = k // 3, k % 3
        acc = acc + mm(yp[:, dy:dy + H, dx:dx + W, :], w2[k])
    y2 = jnp.maximum(acc * s2 + b2, 0.0)
    y3 = mm(y2, w3) * s3 + b3
    out = jnp.maximum(y3 + x, 0.0)
    return jnp.transpose(out, (0, 3, 1, 2))


if __name__ == "__main__":
    # Bottleneck config: downsample=None, stride=1  =>  inplanes == planes * 4
    N, H, W = 2, 8, 8
    planes = 16
    inplanes = planes * 4          # 64
    outplanes = planes * 4         # 64

    key = jax.random.PRNGKey(0)
    ks = jax.random.split(key, 16)

    # Conv weights (PyTorch layout (out, in, kh, kw)), converted to matmul form.
    w1_t = jax.random.normal(ks[0], (planes, inplanes, 1, 1), jnp.float32) * 0.1
    w2_t = jax.random.normal(ks[1], (planes, planes, 3, 3), jnp.float32) * 0.1
    w3_t = jax.random.normal(ks[2], (outplanes, planes, 1, 1), jnp.float32) * 0.1

    w1 = jnp.transpose(w1_t[:, :, 0, 0], (1, 0))                        # (Cin, P)
    w2 = jnp.stack([jnp.transpose(w2_t[:, :, k // 3, k % 3], (1, 0))    # (9, P, P)
                    for k in range(9)], axis=0)
    w3 = jnp.transpose(w3_t[:, :, 0, 0], (1, 0))                        # (P, Cout)

    # BatchNorm parameters (inference mode), folded to scale/bias.
    def bn_params(kg, kb, km, kv, c):
        gamma = 0.5 + jax.random.uniform(kg, (c,), jnp.float32)
        beta = jax.random.normal(kb, (c,), jnp.float32) * 0.1
        rmean = jax.random.normal(km, (c,), jnp.float32) * 0.1
        rvar = 0.5 + jax.random.uniform(kv, (c,), jnp.float32)
        return _fold_bn(gamma, beta, rmean, rvar)

    s1, b1 = bn_params(ks[3], ks[4], ks[5], ks[6], planes)
    s2, b2 = bn_params(ks[7], ks[8], ks[9], ks[10], planes)
    s3, b3 = bn_params(ks[11], ks[12], ks[13], ks[14], outplanes)

    x = jax.random.normal(ks[15], (N, inplanes, H, W), jnp.float32)

    out = bottleneck_forward(x, w1, s1, b1, w2, s2, b2, w3, s3, b3)
    out = jax.block_until_ready(out)

    ref = _reference_forward(x, w1, s1, b1, w2, s2, b2, w3, s3, b3)
    assert out.shape == (N, outplanes, H, W)
    # bf16 MXU inputs on both sides; loose-ish tolerance for accumulation-order
    # differences.
    assert jnp.allclose(out, ref, rtol=1e-2, atol=1e-2), "mismatch vs reference"

    print("KERNEL_OK")
</pallas_src>

<mosaic_0001>
module attributes {stable_mosaic.version = 11 : i64} {
  func.func @_bottleneck_kernel(%arg0: i32, %arg1: memref<1x8x8x128xf32, #tpu.memory_space<vmem>>, %arg2: memref<128x128xbf16, #tpu.memory_space<vmem>>, %arg3: memref<1x128xf32, #tpu.memory_space<vmem>>, %arg4: memref<1x128xf32, #tpu.memory_space<vmem>>, %arg5: memref<1152x128xbf16, #tpu.memory_space<vmem>>, %arg6: memref<1x128xf32, #tpu.memory_space<vmem>>, %arg7: memref<1x128xf32, #tpu.memory_space<vmem>>, %arg8: memref<128x128xbf16, #tpu.memory_space<vmem>>, %arg9: memref<1x128xf32, #tpu.memory_space<vmem>>, %arg10: memref<1x128xf32, #tpu.memory_space<vmem>>, %arg11: memref<1x8x8x128xf32, #tpu.memory_space<vmem>>, %arg12: memref<10x10x128xbf16, #tpu.memory_space<vmem>>, %arg13: memref<64x1152xbf16, #tpu.memory_space<vmem>>) attributes {dimension_semantics = [#tpu.dimension_semantics<parallel>], iteration_bounds = array<i64: 2>, scalar_prefetch = 0 : i64, scratch_operands = 2 : i64, tpu.core_type = #tpu.core_type<tc>, window_params = [{transform_indices = @transform_0, window_bounds = array<i64: 1, 8, 8, 128>}, {pipeline_mode = #tpu.pipeline_mode<synchronous>, transform_indices = @transform_1, window_bounds = array<i64: 128, 128>}, {pipeline_mode = #tpu.pipeline_mode<synchronous>, transform_indices = @transform_2, window_bounds = array<i64: 1, 128>}, {pipeline_mode = #tpu.pipeline_mode<synchronous>, transform_indices = @transform_3, window_bounds = array<i64: 1, 128>}, {pipeline_mode = #tpu.pipeline_mode<synchronous>, transform_indices = @transform_4, window_bounds = array<i64: 1152, 128>}, {pipeline_mode = #tpu.pipeline_mode<synchronous>, transform_indices = @transform_5, window_bounds = array<i64: 1, 128>}, {pipeline_mode = #tpu.pipeline_mode<synchronous>, transform_indices = @transform_6, window_bounds = array<i64: 1, 128>}, {pipeline_mode = #tpu.pipeline_mode<synchronous>, transform_indices = @transform_7, window_bounds = array<i64: 128, 128>}, {pipeline_mode = #tpu.pipeline_mode<synchronous>, transform_indices = @transform_8, window_bounds = array<i64: 1, 128>}, {pipeline_mode = #tpu.pipeline_mode<synchronous>, transform_indices = @transform_9, window_bounds = array<i64: 1, 128>}, {transform_indices = @transform_10, window_bounds = array<i64: 1, 8, 8, 128>}]} {
    %c0 = arith.constant 0 : index
    %c0_0 = arith.constant 0 : index
    %c0_1 = arith.constant 0 : index
    %c0_2 = arith.constant 0 : index
    %0 = vector.load %arg1[%c0, %c0_0, %c0_1, %c0_2] : memref<1x8x8x128xf32, #tpu.memory_space<vmem>>, vector<1x8x8x128xf32>
    %1 = vector.shape_cast %0 : vector<1x8x8x128xf32> to vector<8x8x128xf32>
    %2 = vector.shape_cast %1 : vector<8x8x128xf32> to vector<64x128xf32>
    %3 = arith.truncf %2 : vector<64x128xf32> to vector<64x128xbf16>
    %c0_3 = arith.constant 0 : index
    %c0_4 = arith.constant 0 : index
    %4 = vector.load %arg2[%c0_3, %c0_4] : memref<128x128xbf16, #tpu.memory_space<vmem>>, vector<128x128xbf16>
    %cst = arith.constant dense<0.000000e+00> : vector<64x128xf32>
    %5 = tpu.matmul %3, %4, %cst {dimension_numbers = #tpu.dot_dimension_numbers<[1], [0], [0], [1], [0, 0, 1, 1], [], []>} : vector<64x128xbf16>, vector<128x128xbf16>, vector<64x128xf32> -> vector<64x128xf32>
    %c0_5 = arith.constant 0 : index
    %c0_6 = arith.constant 0 : index
    %6 = vector.load %arg3[%c0_5, %c0_6] : memref<1x128xf32, #tpu.memory_space<vmem>>, vector<1x128xf32>
    %7 = vector.broadcast %6 : vector<1x128xf32> to vector<64x128xf32>
    %8 = arith.mulf %5, %7 : vector<64x128xf32>
    %c0_7 = arith.constant 0 : index
    %c0_8 = arith.constant 0 : index
    %9 = vector.load %arg4[%c0_7, %c0_8] : memref<1x128xf32, #tpu.memory_space<vmem>>, vector<1x128xf32>
    %10 = vector.broadcast %9 : vector<1x128xf32> to vector<64x128xf32>
    %11 = arith.addf %8, %10 : vector<64x128xf32>
    %cst_9 = arith.constant 0.000000e+00 : f32
    %12 = vector.broadcast %cst_9 : f32 to vector<64x128xf32>
    %13 = arith.maximumf %11, %12 : vector<64x128xf32>
    %cst_10 = arith.constant 0.000000e+00 : bf16
    %14 = vector.broadcast %cst_10 : bf16 to vector<1x10x128xbf16>
    %c0_11 = arith.constant 0 : index
    %c0_12 = arith.constant 0 : index
    %c0_13 = arith.constant 0 : index
    %15 = vector.load %arg12[%c0_11, %c0_12, %c0_13] : memref<10x10x128xbf16, #tpu.memory_space<vmem>>, vector<1x10x128xbf16>
    tpu.vector_store %arg12[%c0_11, %c0_12, %c0_13], %14 {strides = array<i32>} : memref<10x10x128xbf16, #tpu.memory_space<vmem>>, vector<1x10x128xbf16>,
    %cst_14 = arith.constant 0.000000e+00 : bf16
    %16 = vector.broadcast %cst_14 : bf16 to vector<1x10x128xbf16>
    %c9 = arith.constant 9 : index
    %c0_15 = arith.constant 0 : index
    %c0_16 = arith.constant 0 : index
    %17 = vector.load %arg12[%c9, %c0_15, %c0_16] : memref<10x10x128xbf16, #tpu.memory_space<vmem>>, vector<1x10x128xbf16>
    tpu.vector_store %arg12[%c9, %c0_15, %c0_16], %16 {strides = array<i32>} : memref<10x10x128xbf16, #tpu.memory_space<vmem>>, vector<1x10x128xbf16>,
    %cst_17 = arith.constant 0.000000e+00 : bf16
    %18 = vector.broadcast %cst_17 : bf16 to vector<10x1x128xbf16>
    %c0_18 = arith.constant 0 : index
    %c0_19 = arith.constant 0 : index
    %c0_20 = arith.constant 0 : index
    %19 = vector.load %arg12[%c0_18, %c0_19, %c0_20] : memref<10x10x128xbf16, #tpu.memory_space<vmem>>, vector<10x1x128xbf16>
    tpu.vector_store %arg12[%c0_18, %c0_19, %c0_20], %18 {strides = array<i32>} : memref<10x10x128xbf16, #tpu.memory_space<vmem>>, vector<10x1x128xbf16>,
    %cst_21 = arith.constant 0.000000e+00 : bf16
    %20 = vector.broadcast %cst_21 : bf16 to vector<10x1x128xbf16>
    %c0_22 = arith.constant 0 : index
    %c9_23 = arith.constant 9 : index
    %c0_24 = arith.constant 0 : index
    %21 = vector.load %arg12[%c0_22, %c9_23, %c0_24] : memref<10x10x128xbf16, #tpu.memory_space<vmem>>, vector<10x1x128xbf16>
    tpu.vector_store %arg12[%c0_22, %c9_23, %c0_24], %20 {strides = array<i32>} : memref<10x10x128xbf16, #tpu.memory_space<vmem>>, vector<10x1x128xbf16>,
    %22 = vector.shape_cast %13 : vector<64x128xf32> to vector<8x8x128xf32>
    %23 = arith.truncf %22 : vector<8x8x128xf32> to vector<8x8x128xbf16>
    %c1 = arith.constant 1 : index
    %c1_25 = arith.constant 1 : index
    %c0_26 = arith.constant 0 : index
    %24 = vector.load %arg12[%c1, %c1_25, %c0_26] : memref<10x10x128xbf16, #tpu.memory_space<vmem>>, vector<8x8x128xbf16>
    tpu.vector_store %arg12[%c1, %c1_25, %c0_26], %23 {strides = array<i32>} : memref<10x10x128xbf16, #tpu.memory_space<vmem>>, vector<8x8x128xbf16>,
    %c0_27 = arith.constant 0 : index
    %c0_28 = arith.constant 0 : index
    %c0_29 = arith.constant 0 : index
    %25 = vector.load %arg12[%c0_27, %c0_28, %c0_29] : memref<10x10x128xbf16, #tpu.memory_space<vmem>>, vector<8x8x128xbf16>
    %26 = vector.shape_cast %25 : vector<8x8x128xbf16> to vector<64x128xbf16>
    %c0_30 = arith.constant 0 : index
    %c0_31 = arith.constant 0 : index
    %27 = vector.load %arg13[%c0_30, %c0_31] : memref<64x1152xbf16, #tpu.memory_space<vmem>>, vector<64x128xbf16>
    tpu.vector_store %arg13[%c0_30, %c0_31], %26 {strides = array<i32>} : memref<64x1152xbf16, #tpu.memory_space<vmem>>, vector<64x128xbf16>,
    %c0_32 = arith.constant 0 : index
    %c1_33 = arith.constant 1 : index
    %c0_34 = arith.constant 0 : index
    %28 = vector.load %arg12[%c0_32, %c1_33, %c0_34] : memref<10x10x128xbf16, #tpu.memory_space<vmem>>, vector<8x8x128xbf16>
    %29 = vector.shape_cast %28 : vector<8x8x128xbf16> to vector<64x128xbf16>
    %c0_35 = arith.constant 0 : index
    %c128 = arith.constant 128 : index
    %30 = vector.load %arg13[%c0_35, %c128] : memref<64x1152xbf16, #tpu.memory_space<vmem>>, vector<64x128xbf16>
    tpu.vector_store %arg13[%c0_35, %c128], %29 {strides = array<i32>} : memref<64x1152xbf16, #tpu.memory_space<vmem>>, vector<64x128xbf16>,
    %c0_36 = arith.constant 0 : index
    %c2 = arith.constant 2 : index
    %c0_37 = arith.constant 0 : index
    %31 = vector.load %arg12[%c0_36, %c2, %c0_37] : memref<10x10x128xbf16, #tpu.memory_space<vmem>>, vector<8x8x128xbf16>
    %32 = vector.shape_cast %31 : vector<8x8x128xbf16> to vector<64x128xbf16>
    %c0_38 = arith.constant 0 : index
    %c256 = arith.constant 256 : index
    %33 = vector.load %arg13[%c0_38, %c256] : memref<64x1152xbf16, #tpu.memory_space<vmem>>, vector<64x128xbf16>
    tpu.vector_store %arg13[%c0_38, %c256], %32 {strides = array<i32>} : memref<64x1152xbf16, #tpu.memory_space<vmem>>, vector<64x128xbf16>,
    %c1_39 = arith.constant 1 : index
    %c0_40 = arith.constant 0 : index
    %c0_41 = arith.constant 0 : index
    %34 = vector.load %arg12[%c1_39, %c0_40, %c0_41] : memref<10x10x128xbf16, #tpu.memory_space<vmem>>, vector<8x8x128xbf16>
    %35 = vector.shape_cast %34 : vector<8x8x128xbf16> to vector<64x128xbf16>
    %c0_42 = arith.constant 0 : index
    %c384 = arith.constant 384 : index
    %36 = vector.load %arg13[%c0_42, %c384] : memref<64x1152xbf16, #tpu.memory_space<vmem>>, vector<64x128xbf16>
    tpu.vector_store %arg13[%c0_42, %c384], %35 {strides = array<i32>} : memref<64x1152xbf16, #tpu.memory_space<vmem>>, vector<64x128xbf16>,
    %c1_43 = arith.constant 1 : index
    %c1_44 = arith.constant 1 : index
    %c0_45 = arith.constant 0 : index
    %37 = vector.load %arg12[%c1_43, %c1_44, %c0_45] : memref<10x10x128xbf16, #tpu.memory_space<vmem>>, vector<8x8x128xbf16>
    %38 = vector.shape_cast %37 : vector<8x8x128xbf16> to vector<64x128xbf16>
    %c0_46 = arith.constant 0 : index
    %c512 = arith.constant 512 : index
    %39 = vector.load %arg13[%c0_46, %c512] : memref<64x1152xbf16, #tpu.memory_space<vmem>>, vector<64x128xbf16>
    tpu.vector_store %arg13[%c0_46, %c512], %38 {strides = array<i32>} : memref<64x1152xbf16, #tpu.memory_space<vmem>>, vector<64x128xbf16>,
    %c1_47 = arith.constant 1 : index
    %c2_48 = arith.constant 2 : index
    %c0_49 = arith.constant 0 : index
    %40 = vector.load %arg12[%c1_47, %c2_48, %c0_49] : memref<10x10x128xbf16, #tpu.memory_space<vmem>>, vector<8x8x128xbf16>
    %41 = vector.shape_cast %40 : vector<8x8x128xbf16> to vector<64x128xbf16>
    %c0_50 = arith.constant 0 : index
    %c640 = arith.constant 640 : index
    %42 = vector.load %arg13[%c0_50, %c640] : memref<64x1152xbf16, #tpu.memory_space<vmem>>, vector<64x128xbf16>
    tpu.vector_store %arg13[%c0_50, %c640], %41 {strides = array<i32>} : memref<64x1152xbf16, #tpu.memory_space<vmem>>, vector<64x128xbf16>,
    %c2_51 = arith.constant 2 : index
    %c0_52 = arith.constant 0 : index
    %c0_53 = arith.constant 0 : index
    %43 = vector.load %arg12[%c2_51, %c0_52, %c0_53] : memref<10x10x128xbf16, #tpu.memory_space<vmem>>, vector<8x8x128xbf16>
    %44 = vector.shape_cast %43 : vector<8x8x128xbf16> to vector<64x128xbf16>
    %c0_54 = arith.constant 0 : index
    %c768 = arith.constant 768 : index
    %45 = vector.load %arg13[%c0_54, %c768] : memref<64x1152xbf16, #tpu.memory_space<vmem>>, vector<64x128xbf16>
    tpu.vector_store %arg13[%c0_54, %c768], %44 {strides = array<i32>} : memref<64x1152xbf16, #tpu.memory_space<vmem>>, vector<64x128xbf16>,
    %c2_55 = arith.constant 2 : index
    %c1_56 = arith.constant 1 : index
    %c0_57 = arith.constant 0 : index
    %46 = vector.load %arg12[%c2_55, %c1_56, %c0_57] : memref<10x10x128xbf16, #tpu.memory_space<vmem>>, vector<8x8x128xbf16>
    %47 = vector.shape_cast %46 : vector<8x8x128xbf16> to vector<64x128xbf16>
    %c0_58 = arith.constant 0 : index
    %c896 = arith.constant 896 : index
    %48 = vector.load %arg13[%c0_58, %c896] : memref<64x1152xbf16, #tpu.memory_space<vmem>>, vector<64x128xbf16>
    tpu.vector_store %arg13[%c0_58, %c896], %47 {strides = array<i32>} : memref<64x1152xbf16, #tpu.memory_space<vmem>>, vector<64x128xbf16>,
    %c2_59 = arith.constant 2 : index
    %c2_60 = arith.constant 2 : index
    %c0_61 = arith.constant 0 : index
    %49 = vector.load %arg12[%c2_59, %c2_60, %c0_61] : memref<10x10x128xbf16, #tpu.memory_space<vmem>>, vector<8x8x128xbf16>
    %50 = vector.shape_cast %49 : vector<8x8x128xbf16> to vector<64x128xbf16>
    %c0_62 = arith.constant 0 : index
    %c1024 = arith.constant 1024 : index
    %51 = vector.load %arg13[%c0_62, %c1024] : memref<64x1152xbf16, #tpu.memory_space<vmem>>, vector<64x128xbf16>
    tpu.vector_store %arg13[%c0_62, %c1024], %50 {strides = array<i32>} : memref<64x1152xbf16, #tpu.memory_space<vmem>>, vector<64x128xbf16>,
    %c0_63 = arith.constant 0 : index
    %c0_64 = arith.constant 0 : index
    %52 = vector.load %arg13[%c0_63, %c0_64] : memref<64x1152xbf16, #tpu.memory_space<vmem>>, vector<64x1152xbf16>
    %c0_65 = arith.constant 0 : index
    %c0_66 = arith.constant 0 : index
    %53 = vector.load %arg5[%c0_65, %c0_66] : memref<1152x128xbf16, #tpu.memory_space<vmem>>, vector<1152x128xbf16>
    %cst_67 = arith.constant dense<0.000000e+00> : vector<64x128xf32>
    %54 = tpu.matmul %52, %53, %cst_67 {dimension_numbers = #tpu.dot_dimension_numbers<[1], [0], [0], [1], [0, 0, 1, 1], [], []>} : vector<64x1152xbf16>, vector<1152x128xbf16>, vector<64x128xf32> -> vector<64x128xf32>
    %c0_68 = arith.constant 0 : index
    %c0_69 = arith.constant 0 : index
    %55 = vector.load %arg6[%c0_68, %c0_69] : memref<1x128xf32, #tpu.memory_space<vmem>>, vector<1x128xf32>
    %56 = vector.broadcast %55 : vector<1x128xf32> to vector<64x128xf32>
    %57 = arith.mulf %54, %56 : vector<64x128xf32>
    %c0_70 = arith.constant 0 : index
    %c0_71 = arith.constant 0 : index
    %58 = vector.load %arg7[%c0_70, %c0_71] : memref<1x128xf32, #tpu.memory_space<vmem>>, vector<1x128xf32>
    %59 = vector.broadcast %58 : vector<1x128xf32> to vector<64x128xf32>
    %60 = arith.addf %57, %59 : vector<64x128xf32>
    %cst_72 = arith.constant 0.000000e+00 : f32
    %61 = vector.broadcast %cst_72 : f32 to vector<64x128xf32>
    %62 = arith.maximumf %60, %61 : vector<64x128xf32>
    %63 = arith.truncf %62 : vector<64x128xf32> to vector<64x128xbf16>
    %c0_73 = arith.constant 0 : index
    %c0_74 = arith.constant 0 : index
    %64 = vector.load %arg8[%c0_73, %c0_74] : memref<128x128xbf16, #tpu.memory_space<vmem>>, vector<128x128xbf16>
    %cst_75 = arith.constant dense<0.000000e+00> : vector<64x128xf32>
    %65 = tpu.matmul %63, %64, %cst_75 {dimension_numbers = #tpu.dot_dimension_numbers<[1], [0], [0], [1], [0, 0, 1, 1], [], []>} : vector<64x128xbf16>, vector<128x128xbf16>, vector<64x128xf32> -> vector<64x128xf32>
    %c0_76 = arith.constant 0 : index
    %c0_77 = arith.constant 0 : index
    %66 = vector.load %arg9[%c0_76, %c0_77] : memref<1x128xf32, #tpu.memory_space<vmem>>, vector<1x128xf32>
    %67 = vector.broadcast %66 : vector<1x128xf32> to vector<64x128xf32>
    %68 = arith.mulf %65, %67 : vector<64x128xf32>
    %c0_78 = arith.constant 0 : index
    %c0_79 = arith.constant 0 : index
    %69 = vector.load %arg10[%c0_78, %c0_79] : memref<1x128xf32, #tpu.memory_space<vmem>>, vector<1x128xf32>
    %70 = vector.broadcast %69 : vector<1x128xf32> to vector<64x128xf32>
    %71 = arith.addf %68, %70 : vector<64x128xf32>
    %72 = arith.addf %71, %2 : vector<64x128xf32>
    %cst_80 = arith.constant 0.000000e+00 : f32
    %73 = vector.broadcast %cst_80 : f32 to vector<64x128xf32>
    %74 = arith.maximumf %72, %73 : vector<64x128xf32>
    %75 = vector.shape_cast %74 : vector<64x128xf32> to vector<8x8x128xf32>
    %c0_81 = arith.constant 0 : index
    %c0_82 = arith.constant 0 : index
    %c0_83 = arith.constant 0 : index
    %c0_84 = arith.constant 0 : index
    %76 = vector.load %arg11[%c0_81, %c0_82, %c0_83, %c0_84] : memref<1x8x8x128xf32, #tpu.memory_space<vmem>>, vector<1x8x8x128xf32>
    %77 = vector.shape_cast %76 : vector<1x8x8x128xf32> to vector<8x8x128xf32>
    %78 = vector.shape_cast %75 : vector<8x8x128xf32> to vector<1x8x8x128xf32>
    tpu.vector_store %arg11[%c0_81, %c0_82, %c0_83, %c0_84], %78 {strides = array<i32>} : memref<1x8x8x128xf32, #tpu.memory_space<vmem>>, vector<1x8x8x128xf32>,
    return
  }
  func.func @transform_0(%arg0: i32) -> (i32, i32, i32, i32) {
    %c0_i32 = arith.constant 0 : i32
    %c0_i32_0 = arith.constant 0 : i32
    %c0_i32_1 = arith.constant 0 : i32
    %c0_i32_2 = arith.constant 0 : i32
    return %arg0, %c0_i32, %c0_i32_0, %c0_i32_1 : i32, i32, i32, i32
  }
  func.func @transform_1(%arg0: i32) -> (i32, i32) {
    %c0_i32 = arith.constant 0 : i32
    %c0_i32_0 = arith.constant 0 : i32
    %c0_i32_1 = arith.constant 0 : i32
    return %c0_i32, %c0_i32_0 : i32, i32
  }
  func.func @transform_2(%arg0: i32) -> (i32, i32) {
    %c0_i32 = arith.constant 0 : i32
    %c0_i32_0 = arith.constant 0 : i32
    %c0_i32_1 = arith.constant 0 : i32
    return %c0_i32, %c0_i32_0 : i32, i32
  }
  func.func @transform_3(%arg0: i32) -> (i32, i32) {
    %c0_i32 = arith.constant 0 : i32
    %c0_i32_0 = arith.constant 0 : i32
    %c0_i32_1 = arith.constant 0 : i32
    return %c0_i32, %c0_i32_0 : i32, i32
  }
  func.func @transform_4(%arg0: i32) -> (i32, i32) {
    %c0_i32 = arith.constant 0 : i32
    %c0_i32_0 = arith.constant 0 : i32
    %c0_i32_1 = arith.constant 0 : i32
    return %c0_i32, %c0_i32_0 : i32, i32
  }
  func.func @transform_5(%arg0: i32) -> (i32, i32) {
    %c0_i32 = arith.constant 0 : i32
    %c0_i32_0 = arith.constant 0 : i32
    %c0_i32_1 = arith.constant 0 : i32
    return %c0_i32, %c0_i32_0 : i32, i32
  }
  func.func @transform_6(%arg0: i32) -> (i32, i32) {
    %c0_i32 = arith.constant 0 : i32
    %c0_i32_0 = arith.constant 0 : i32
    %c0_i32_1 = arith.constant 0 : i32
    return %c0_i32, %c0_i32_0 : i32, i32
  }
  func.func @transform_7(%arg0: i32) -> (i32, i32) {
    %c0_i32 = arith.constant 0 : i32
    %c0_i32_0 = arith.constant 0 : i32
    %c0_i32_1 = arith.constant 0 : i32
    return %c0_i32, %c0_i32_0 : i32, i32
  }
  func.func @transform_8(%arg0: i32) -> (i32, i32) {
    %c0_i32 = arith.constant 0 : i32
    %c0_i32_0 = arith.constant 0 : i32
    %c0_i32_1 = arith.constant 0 : i32
    return %c0_i32, %c0_i32_0 : i32, i32
  }
  func.func @transform_9(%arg0: i32) -> (i32, i32) {
    %c0_i32 = arith.constant 0 : i32
    %c0_i32_0 = arith.constant 0 : i32
    %c0_i32_1 = arith.constant 0 : i32
    return %c0_i32, %c0_i32_0 : i32, i32
  }
  func.func @transform_10(%arg0: i32) -> (i32, i32, i32, i32) {
    %c0_i32 = arith.constant 0 : i32
    %c0_i32_0 = arith.constant 0 : i32
    %c0_i32_1 = arith.constant 0 : i32
    %c0_i32_2 = arith.constant 0 : i32
    return %arg0, %c0_i32, %c0_i32_0, %c0_i32_1 : i32, i32, i32, i32
  }
}

</mosaic_0001>

<bundles_post_ra>
// kernel: bottleneck_forward.1
= control target key start
LH: loop header
LB: loop body
LE: loop exit
PB: predicated region body
PF: predicated region fallthrough
CT: control target
= control target key end

     0   :  { %s3587_s13 = smov 0   ;;  %s4195_s0 = inlined_call_operand.vmem [shape: f32[2,8,8,128], index: 0, kind: input, shape index: {}]   ;;  %s4196_s1 = inlined_call_operand.vmem [shape: bf16[128,128], index: 1, kind: input, shape index: {}]   ;;  %s4197_s2 = inlined_call_operand.vmem [shape: f32[1,128], index: 2, kind: input, shape index: {}]   ;;  %s4198_s3 = inlined_call_operand.vmem [shape: f32[1,128], index: 3, kind: input, shape index: {}]   ;;  %s4199_s4 = inlined_call_operand.vmem [shape: bf16[1152,128], index: 4, kind: input, shape index: {}]   ;;  %s4200_s5 = inlined_call_operand.vmem [shape: f32[1,128], index: 5, kind: input, shape index: {}]   ;;  %s4201_s6 = inlined_call_operand.vmem [shape: f32[1,128], index: 6, kind: input, shape index: {}]   ;;  %s4202_s7 = inlined_call_operand.vmem [shape: bf16[128,128], index: 7, kind: input, shape index: {}]   ;;  %s4203_s8 = inlined_call_operand.vmem [shape: f32[1,128], index: 8, kind: input, shape index: {}]   ;;  %s4204_s9 = inlined_call_operand.vmem [shape: f32[1,128], index: 9, kind: input, shape index: {}]   ;;  %s4205_s10 = inlined_call_operand.vmem [shape: f32[2,8,8,128], index: 10, kind: output, shape index: {}]  }
   0x1 LB: > { %s2905_s14 = sadd.s32 4294967295, %s3529_s13   ;;  %p2909_p0 = scmp.ge.s32.totalorder %s3529_s13, 1  ;;  %s3529_s13 = sphi %s3587_s13, %s20_s13  }
   0x2   : > { %p312_p1 = scmp.lt.s32.totalorder %s3529_s13, 3 }
   0x4   : > { %p313_p2 = pnand %p2909_p0, %p312_p1 }
   0x6   : > { %316 = sbr.rel (%p313_p2) target bundleno = 810 (0x32a), region = 60 }
   0xb   : > { %v3381_v0 = vld [vmem:[%s4196_s1 + $0x38] sm:$0xff]   ;;  %p350_p3 = scmp.lt.s32.totalorder %s2905_s14, 1  ;;  %v3382_v1 = vld [vmem:[%s4196_s1 + $0x30] sm:$0xff]   ;;  %v3383_v2 = vld [vmem:[%s4196_s1 + $0x28] sm:$0xff]   ;;  %vm545_vm0 = vcmask 1040384   ;;  %v3531_v23 = vmov 0  }
   0xc   : > { %3284 = vmatprep.subr.bf16.mxu0 %v3381_v0  ;;  %v3384_v3 = vld [vmem:[%s4196_s1 + $0x20] sm:$0xff]   ;;  %v3385_v7 = vld [vmem:[%s4196_s1 + $0x18] sm:$0xff]   ;;  %v3386_v8 = vld [vmem:[%s4196_s1 + $0x10] sm:$0xff]   ;;  %vm546_vm1 = vsmask.f32 256  ;;  %vm968_vm5 = vcmask 1042432  }
   0xd   : > { %s4235_s14 = smov (!%p350_p3, %s2905_s14), 1  ;;  %3285 = vmatpush3.bf16.msra.mxu0 %v3381_v0  ;;  %v3387_v9 = vld [vmem:[%s4196_s1 + $0x8] sm:$0xff]   ;;  %v3388_v10 = vld [vmem:[%s4196_s1] sm:$0xff]   ;;  %vm578_vm2 = vsmask.f32 7938  ;;  %vm3637_vm3 = vmand %vm545_vm0, %vm546_vm1  ;;  %vm969_vm6 = vcmask 1046532  }
   0xe   : > { %3286 = vmatprep.subr.bf16.mxu0 %v3382_v1  ;;  %s3078_s21 = sshll.u32 %s4235_s14, 6  ;;  %v557_v21 = vld [vmem:[#allocation2 + $0x18] sm:$0x1]  ;;  %v589_v22 = vld [vmem:[#allocation2 + $0x1c] sm:$0x1]  ;;  %vm3644_vm4 = vmand %vm545_vm0, %vm578_vm2  ;;  %vm723_vm11 = vcmask 1043456  }
   0xf   : > { %s3612_s24 = scalar_lea.vmem %s4195_s0, %s3078_s21  ;;  %540 = vst [vmem:[#allocation2] sm:$0xf] %v3531_v23  ;;  %541 = vst [vmem:[#allocation2 + $0x4] sm:$0x1] %v3531_v23  ;;  %v558_v24 = vsel %vm3637_vm3, 0, %v557_v21  ;;  %v590_v26 = vsel %vm3644_vm4, 0, %v589_v22  ;;  %s4175_s15 = scalar_lea.vmem %s4205_s10, %s3078_s21 }
  0x10   : > { %v361_v4 = vld [vmem:[%s3612_s24] sm:$0xff]  ;;  %v362_v5 = vld [vmem:[%s3612_s24 + $0x8] sm:$0xff]  ;;  %v363_v11 = vld [vmem:[%s3612_s24 + $0x10] sm:$0xff]  ;;  %543 = vst [vmem:[#allocation2 + $0x48] sm:$0xf] %v3531_v23 }
  0x11   : > { %3287 = vmatpush3.bf16.msra.mxu0 %v3382_v1  ;;  %v369_v6 = vpack.c.bf16 %v362_v5, %v361_v4  ;;  %v364_v12 = vld [vmem:[%s3612_s24 + $0x18] sm:$0xff]  ;;  %v365_v13 = vld [vmem:[%s3612_s24 + $0x20] sm:$0xff]  ;;  %v366_v14 = vld [vmem:[%s3612_s24 + $0x28] sm:$0xff]  ;;  %544 = vst [vmem:[#allocation2 + $0x4c] sm:$0x1] %v3531_v23 }
  0x12   : > { %3288 = vmatprep.subr.bf16.mxu0 %v3383_v2  ;;  %v370_v15 = vpack.c.bf16 %v364_v12, %v363_v11  ;;  %v371_v16 = vpack.c.bf16 %v366_v14, %v365_v13  ;;  %v367_v17 = vld [vmem:[%s3612_s24 + $0x30] sm:$0xff]  ;;  %v368_v18 = vld [vmem:[%s3612_s24 + $0x38] sm:$0xff]  ;;  %559 = vst [vmem:[#allocation2 + $0x18] sm:$0x1] %v558_v24  ;;  %v551_v27 = vld [vmem:[#allocation2 + $0x8] sm:$0x1] }
  0x13   : > { %3300 = vmatprep.mubr.bf16.mxu0 %v369_v6  ;;  %v372_v19 = vpack.c.bf16 %v368_v18, %v367_v17  ;;  %v583_v28 = vld [vmem:[#allocation2 + $0xc] sm:$0x1]  ;;  %591 = vst [vmem:[#allocation2 + $0x1c] sm:$0x1] %v590_v26  ;;  %v552_v29 = vsel %vm3637_vm3, 0, %v551_v27  ;;  %v3389_v31 = vld [vmem:[%s4199_s4 + $0xf8] sm:$0xff]   ;;  %vm3738_vm7 = vmor %vm968_vm5, %vm969_vm6 }
  0x14   : > { %v584_v30 = vsel %vm3644_vm4, 0, %v583_v28  ;;  %553 = vst [vmem:[#allocation2 + $0x8] sm:$0x1] %v552_v29  ;;  %v560_v32 = vld [vmem:[#allocation2 + $0x20] sm:$0x1]  ;;  %v3390_v34 = vld [vmem:[%s4199_s4 + $0xb8] sm:$0xff]   ;;  %vm3824_vm12 = vmand %vm723_vm11, %vm578_vm2 }
  0x15   : > { %3289 = vmatpush3.bf16.msra.mxu0 %v3383_v2  ;;  %585 = vst [vmem:[#allocation2 + $0xc] sm:$0x1] %v584_v30  ;;  %v592_v33 = vld [vmem:[#allocation2 + $0x24] sm:$0x1]  ;;  %v561_v35 = vsel %vm3637_vm3, 0, %v560_v32  ;;  %v3392_v46 = vld [vmem:[%s4199_s4 + $0xf0] sm:$0xff]  }
  0x16   : > { %3290 = vmatprep.subr.bf16.mxu0 %v3384_v3  ;;  %v593_v36 = vsel %vm3644_vm4, 0, %v592_v33  ;;  %562 = vst [vmem:[#allocation2 + $0x20] sm:$0x1] %v561_v35  ;;  %v554_v37 = vld [vmem:[#allocation2 + $0x10] sm:$0x1]  ;;  %v3391_v48 = vld [vmem:[%s4199_s4 + $0x78] sm:$0xff]  }
  0x17   : > { %594 = vst [vmem:[#allocation2 + $0x24] sm:$0x1] %v593_v36  ;;  %v586_v38 = vld [vmem:[#allocation2 + $0x14] sm:$0x1]  ;;  %v580_v39 = vld [vmem:[#allocation2 + $0x4] sm:$0x1]  ;;  %3100 = vmatprep.subr.bf16.mxu1 %v3391_v48 }
  0x18   : > { %v607_v40 = vld [vmem:[#allocation2 + $0x4c] sm:$0x1]  ;;  %v555_v41 = vsel %vm3637_vm3, 0, %v554_v37  ;;  %v581_v42 = vsel %vm3644_vm4, 0, %v580_v39  ;;  %v587_v44 = vsel %vm3644_vm4, 0, %v586_v38  ;;  %v3393_v55 = vld [vmem:[%s4199_s4 + $0x38] sm:$0xff]  }
  0x19   : > { %3291 = vmatpush3.bf16.msra.mxu0 %v3384_v3  ;;  %v608_v43 = vsel %vm3644_vm4, 0, %v607_v40  ;;  %556 = vst [vmem:[#allocation2 + $0x10] sm:$0x1] %v555_v41  ;;  %582 = vst [vmem:[#allocation2 + $0x4] sm:$0x1] %v581_v42  ;;  %v3394_v56 = vld [vmem:[%s4199_s4 + $0xb0] sm:$0xff]   ;;  %3101 = vmatpush3.bf16.msra.mxu1 %v3393_v55 }
  0x1a   : > { %3292 = vmatprep.subr.bf16.mxu0 %v3385_v7  ;;  %609 = vst [vmem:[#allocation2 + $0x4c] sm:$0x1] %v608_v43  ;;  %588 = vst [vmem:[#allocation2 + $0x14] sm:$0x1] %v587_v44  ;;  %v569_v45 = vld [vmem:[#allocation2 + $0x38] sm:$0x1] }
  0x1b   : > { %v570_v47 = vsel %vm3637_vm3, 0, %v569_v45  ;;  %v601_v49 = vld [vmem:[#allocation2 + $0x3c] sm:$0x1]  ;;  %v563_v50 = vld [vmem:[#allocation2 + $0x28] sm:$0x1]  ;;  %v3395_v58 = vld [vmem:[%s4199_s4 + $0x70] sm:$0xff]  }
  0x1c   : > { %571 = vst [vmem:[#allocation2 + $0x38] sm:$0x1] %v570_v47  ;;  %v595_v51 = vld [vmem:[#allocation2 + $0x2c] sm:$0x1]  ;;  %v602_v52 = vsel %vm3644_vm4, 0, %v601_v49  ;;  %v564_v53 = vsel %vm3637_vm3, 0, %v563_v50  ;;  %3102 = vmatprep.subr.bf16.mxu1 %v3395_v58 }
  0x1d   : > { %3293 = vmatpush3.bf16.msra.mxu0 %v3385_v7  ;;  %v596_v54 = vsel %vm3644_vm4, 0, %v595_v51  ;;  %603 = vst [vmem:[#allocation2 + $0x3c] sm:$0x1] %v602_v52  ;;  %565 = vst [vmem:[#allocation2 + $0x28] sm:$0x1] %v564_v53  ;;  %v3396_v57 = vld [vmem:[%s4199_s4 + $0xe8] sm:$0xff]  }
  0x1e   : > { %3294 = vmatprep.subr.bf16.mxu0 %v3386_v8  ;;  %597 = vst [vmem:[#allocation2 + $0x2c] sm:$0x1] %v596_v54  ;;  %v572_v59 = vld [vmem:[#allocation2 + $0x40] sm:$0x1]  ;;  %v3397_v60 = vld [vmem:[%s4199_s4 + $0x30] sm:$0xff]   ;;  %v3398_v61 = vld [vmem:[%s4199_s4 + $0xa8] sm:$0xff]  }
  0x1f   : > { %v573_v62 = vsel %vm3637_vm3, 0, %v572_v59  ;;  %v548_v63 = vld [vmem:[#allocation2] sm:$0x1]  ;;  %v604_v0 = vld [vmem:[#allocation2 + $0x44] sm:$0x1]  ;;  %3103 = vmatpush3.bf16.msra.mxu1 %v3397_v60  ;;  %v3399_v5 = vld [vmem:[%s4199_s4 + $0x68] sm:$0xff]  }
  0x20   : > { %574 = vst [vmem:[#allocation2 + $0x40] sm:$0x1] %v573_v62  ;;  %v3400_v1 = vld [vmem:[%s4199_s4 + $0xe0] sm:$0xff]   ;;  %v549_v2 = vsel %vm3637_vm3, 0, %v548_v63  ;;  %v605_v3 = vsel %vm3644_vm4, 0, %v604_v0  ;;  %3104 = vmatprep.subr.bf16.mxu1 %v3399_v5  ;;  %v3404_v11 = vld [vmem:[%s4199_s4 + $0xd8] sm:$0xff]  }
  0x21   : > { %3295 = vmatpush3.bf16.msra.mxu0 %v3386_v8  ;;  %v566_v4 = vld [vmem:[#allocation2 + $0x30] sm:$0x1]  ;;  %550 = vst [vmem:[#allocation2] sm:$0x1] %v549_v2  ;;  %606 = vst [vmem:[#allocation2 + $0x44] sm:$0x1] %v605_v3 }
  0x22   : > { %3296 = vmatprep.subr.bf16.mxu0 %v3387_v9  ;;  %v567_v6 = vsel %vm3637_vm3, 0, %v566_v4  ;;  %v598_v7 = vld [vmem:[#allocation2 + $0x34] sm:$0x1]  ;;  %v3401_v8 = vld [vmem:[%s4199_s4 + $0x28] sm:$0xff]   ;;  %v936_v12 = vld [vmem:[#allocation2] sm:$0xe] }
  0x23   : > { %568 = vst [vmem:[#allocation2 + $0x30] sm:$0x1] %v567_v6  ;;  %3105 = vmatpush3.bf16.msra.mxu1 %v3401_v8  ;;  %v3403_v13 = vld [vmem:[%s4199_s4 + $0x60] sm:$0xff]   ;;  %v2932_v18 = vrot.slane %v936_v12, 9  ;;  %v3408_v21 = vld [vmem:[%s4199_s4 + $0xd0] sm:$0xff]   ;;  %v3407_v24 = vld [vmem:[%s4199_s4 + $0x58] sm:$0xff]  }
  0x24   : > { %v937_v14 = vld [vmem:[#allocation2 + $0x4] sm:$0x1]  ;;  %3106 = vmatprep.subr.bf16.mxu1 %v3403_v13  ;;  %v3409_v27 = vld [vmem:[%s4199_s4 + $0x18] sm:$0xff]   ;;  %v3410_v28 = vld [vmem:[%s4199_s4 + $0x90] sm:$0xff]   ;;  %vm805_vm8 = vsmask.f32 3328 }
  0x25   : > { %3297 = vmatpush3.bf16.msra.mxu0 %v3387_v9  ;;  %v3402_v9 = vld [vmem:[%s4199_s4 + $0xa0] sm:$0xff]   ;;  %v3412_v32 = vld [vmem:[%s4199_s4 + $0xc8] sm:$0xff]   ;;  %v3411_v33 = vld [vmem:[%s4199_s4 + $0x50] sm:$0xff]   ;;  %vm806_vm9 = vsmask.f32 7440 }
  0x26   : > { %3298 = vmatprep.subr.bf16.mxu0 %v3388_v10  ;;  %v790_v29 = vld [vmem:[#allocation2 + $0x4] sm:$0x1]  ;;  %v3414_v37 = vld [vmem:[%s4199_s4 + $0x88] sm:$0xff]   ;;  %vm3774_vm10 = vmor %vm805_vm8, %vm806_vm9 }
  0x27   : > { %v818_v36 = vshll.u32 %v790_v29, 16  ;;  %v3415_v38 = vld [vmem:[%s4199_s4 + $0x48] sm:$0xff]   ;;  %v3416_v39 = vld [vmem:[%s4199_s4 + $0xc0] sm:$0xff]   ;;  %v3423_v48 = vld [vmem:[%s4199_s4 + $0x1f8] sm:$0xff]  }
  0x28   : > { %v789_v23 = vld [vmem:[#allocation2] sm:$0xf]  ;;  %v3417_v44 = vld [vmem:[%s4199_s4 + $0x8] sm:$0xff]   ;;  %v3431_v50 = vld [vmem:[%s4199_s4 + $0x178] sm:$0xff]  }
  0x29   : > { %3299 = vmatpush3.bf16.msra.mxu0 %v3388_v10  ;;  %v599_v10 = vsel %vm3644_vm4, 0, %v598_v7  ;;  %v809_v25 = vshrl.u32 %v789_v23, 16  ;;  %v812_v26 = vshll.u32 %v789_v23, 16  ;;  %v820_v41 = vrot.slane %v818_v36, 5  ;;  %v773_v42 = vld [vmem:[#allocation2] sm:$0xf] }
  0x2a   : > { %3140 = vmatprep.subr.bf16.mxu0 %v3389_v31  ;;  %600 = vst [vmem:[#allocation2 + $0x34] sm:$0x1] %v599_v10  ;;  %781 = vst [vmem:[#allocation3] sm:$0xf] %v773_v42  ;;  %v3422_v47 = vld [vmem:[%s4199_s4 + $0x40] sm:$0xff]   ;;  %v3507_v17 = vld [vmem:[%s4202_s7 + $0x38] sm:$0xff]  }
  0x2b   : > { %v811_v30 = vrot.slane %v809_v25, 4  ;;  %v814_v31 = vrot.slane %v812_v26, 5  ;;  %v3424_v49 = vld [vmem:[%s4199_s4] sm:$0xff]   ;;  %v575_v51 = vld [vmem:[#allocation2 + $0x48] sm:$0x1] }
  0x2c   : > { %3301 = vmatmul.mubr.bf16.vlgmr.msra.gmra.mxu0 %v370_v15  ;;  %v3405_v15 = vld [vmem:[%s4199_s4 + $0x20] sm:$0xff]   ;;  %v576_v52 = vsel %vm3637_vm3, 0, %v575_v51  ;;  %v1435_v2 = vld [vmem:[#allocation2 + $0x4c] sm:$0x1]  ;;  %v737_v36 = vld [vmem:[#allocation2 + $0x18] sm:$0xf] }
  0x2d   : > { %3304 = vmatprep.mubr.bf16.mxu0 %v371_v16  ;;  %3141 = vmatpush3.bf16.msra.mxu0 %v3390_v34  ;;  %v3406_v16 = vld [vmem:[%s4199_s4 + $0x98] sm:$0xff]   ;;  %v3413_v34 = vld [vmem:[%s4199_s4 + $0x10] sm:$0xff]   ;;  %v815_v35 = vor.u32 %v814_v31, %v811_v30  ;;  %577 = vst [vmem:[#allocation2 + $0x48] sm:$0x1] %v576_v52  ;;  %v1482_v4 = vrot.slane %v1435_v2, 5 }
  0x2e   : > { %3142 = vmatprep.subr.bf16.mxu0 %v3392_v46  ;;  %3107 = vmatpush3.bf16.msra.mxu1 %v3405_v15  ;;  %v3418_v46 = vld [vmem:[%s4199_s4 + $0x80] sm:$0xff]  }
  0x2f   : > { %3108 = vmatprep.subr.bf16.mxu1 %v3407_v24  ;;  %v816_v40 = vrot.slane %v815_v35, 4  ;;  %v3807_v6 = vld [vmem:[%s4197_s2] ss:$0 sm:$0xff]  ;;  %v746_v2 = vld [vmem:[#allocation2 + $0x24] sm:$0x1]  ;;  %v3425_v35 = vld [vmem:[%s4199_s4 + $0x1b8] sm:$0xff]  }
  0x30   : > { %v3812_v8 = vld [vmem:[%s4198_s3] ss:$0 sm:$0xff] }
  0x31   : > { %3143 = vmatpush3.bf16.msra.mxu0 %v3394_v56  ;;  %v821_v45 = vsel %vm3774_vm10, %v816_v40, %v820_v41  ;;  %v1291_v56 = vld [vmem:[#allocation2 + $0x4c] sm:$0x1] }
  0x32   : > { %3144 = vmatprep.subr.bf16.mxu0 %v3396_v57  ;;  %3109 = vmatpush3.bf16.msra.mxu1 %v3409_v27  ;;  %928 = vst [vmem:[#allocation3 + $0x4] sm:$0xf] %v821_v45  ;;  %v1400_v60 = vshll.u32 %v1291_v56, 16 }
  0x33   : > { %3110 = vmatprep.subr.bf16.mxu1 %v3411_v33 }
  0x34   : > { %3305 = vmatmul.mubr.bf16.gmra.mxu0 %v372_v19  ;;  %v973_v19 = vrot.slane %v937_v14, 5  ;;  %v1290_v53 = vld [vmem:[#allocation2 + $0x48] sm:$0xf]  ;;  %v1402_v63 = vrot.slane %v1400_v60, 5 }
  0x35   : > { %3145 = vmatpush3.bf16.msra.mxu0 %v3398_v61  ;;  %v1391_v54 = vshrl.u32 %v1290_v53, 16  ;;  %v1394_v55 = vshll.u32 %v1290_v53, 16  ;;  %v1267_v61 = vld [vmem:[#allocation2 + $0x48] sm:$0xf] }
  0x36   : > { %3146 = vmatprep.subr.bf16.mxu0 %v3400_v1  ;;  %v974_v22 = vsel %vm3738_vm7, %v2932_v18, %v973_v19  ;;  %3111 = vmatpush3.bf16.msra.mxu1 %v3413_v34  ;;  %1275 = vst [vmem:[#allocation3 + $0x114] sm:$0xf] %v1267_v61  ;;  %v1434_v1 = vld [vmem:[#allocation2 + $0x48] sm:$0xe] }
  0x37   : > { %1011 = vst [vmem:[#allocation3 + $0x8] sm:$0xf] %v974_v22  ;;  %3112 = vmatprep.subr.bf16.mxu1 %v3415_v38  ;;  %v1393_v57 = vrot.slane %v1391_v54, 4  ;;  %v1396_v58 = vrot.slane %v1394_v55, 5  ;;  %v2955_v3 = vrot.slane %v1434_v1, 9 }
  0x38   : > { %v743_v1 = vld [vmem:[#allocation2 + $0x20] sm:$0xf] }
  0x39   : > { %3147 = vmatpush3.bf16.msra.mxu0 %v3402_v9  ;;  %v1397_v59 = vor.u32 %v1396_v58, %v1393_v57  ;;  %v1483_v5 = vsel %vm3738_vm7, %v2955_v3, %v1482_v4 }
  0x3a   : > { %3148 = vmatprep.subr.bf16.mxu0 %v3404_v11  ;;  %3113 = vmatpush3.bf16.msra.mxu1 %v3417_v44  ;;  %1499 = vst [vmem:[#allocation3 + $0x11c] sm:$0xf] %v1483_v5 }
  0x3b   : > { %3114 = vmatprep.subr.bf16.mxu1 %v3422_v47  ;;  %v1398_v62 = vrot.slane %v1397_v59, 4 }
  0x3d   : > { %3149 = vmatpush3.bf16.msra.mxu0 %v3406_v16  ;;  %v1403_v0 = vsel %vm3774_vm10, %v1398_v62, %v1402_v63 }
  0x3e   : > { %3150 = vmatprep.subr.bf16.mxu0 %v3408_v21  ;;  %3115 = vmatpush3.bf16.msra.mxu1 %v3424_v49  ;;  %1419 = vst [vmem:[#allocation3 + $0x118] sm:$0xf] %v1403_v0  ;;  %v728_v49 = vld [vmem:[#allocation2 + $0xc] sm:$0x1] }
  0x3f   : > { %3180 = vmatprep.subr.bf16.mxu1 %v3431_v50 }
  0x41   : > { %3151 = vmatpush3.bf16.msra.mxu0 %v3410_v28 }
  0x42   : > { %3152 = vmatprep.subr.bf16.mxu0 %v3412_v32 }
  0x45   : > { %3153 = vmatpush3.bf16.msra.mxu0 %v3414_v37  ;;  %v740_v37 = vld [vmem:[#allocation2 + $0x1c] sm:$0x1] }
  0x46   : > { %3154 = vmatprep.subr.bf16.mxu0 %v3416_v39 }
  0x49   : > { %3155 = vmatpush3.bf16.msra.mxu0 %v3418_v46 }
  0x4a   : > { %3220 = vmatprep.subr.bf16.mxu0 %v3423_v48  ;;  %v725_v48 = vld [vmem:[#allocation2 + $0x8] sm:$0xf] }
  0xec   : > { %v3302_v7 = vpop.f32.mrf.mxu0 }
  0xed   : > { %v511_v9 = vmul.f32 %v3302_v7, %v3807_v6 }
  0xee   : > { %v471_v10 = vpop.f32.mrf.mxu0 }
  0xef   : > { %v526_v11 = vadd.f32 %v3812_v8, %v511_v9  ;;  %v509_v12 = vmul.f32 %v3807_v6, %v471_v10 }
  0xf0   : > { %v3303_v13 = vpop.f32.mrf.mxu0 }
  0xf1   : > { %v534_v14 = vmax.f32 %v526_v11, 0.0  ;;  %v524_v15 = vadd.f32 %v3812_v8, %v509_v12  ;;  %v512_v16 = vmul.f32 %v3303_v13, %v3807_v6  ;;  %v731_v11 = vld [vmem:[#allocation2 + $0x10] sm:$0xf]  ;;  %v734_v12 = vld [vmem:[#allocation2 + $0x14] sm:$0x1] }
  0xf2   : > { %v474_v18 = vpop.f32.mrf.mxu0 }
  0xf3   : > { %v3082_v19 = vpack.c.bf16 %v534_v14, %v534_v14  ;;  %v532_v21 = vmax.f32 %v524_v15, 0.0  ;;  %v527_v22 = vadd.f32 %v3812_v8, %v512_v16  ;;  %v510_v23 = vmul.f32 %v3807_v6, %v474_v18 }
  0xf4   : > { %v3306_v24 = vpop.f32.mrf.mxu0 }
  0xf5   : > { %v659_v25 = vshrl.u32 %v3082_v19, 16  ;;  %v3080_v26 = vpack.c.bf16 %v532_v21, %v532_v21  ;;  %v535_v27 = vmax.f32 %v527_v22, 0.0  ;;  %v525_v28 = vadd.f32 %v3812_v8, %v510_v23 }
  0xf6   : > { %v515_v29 = vmul.f32 %v3306_v24, %v3807_v6  ;;  %v487_v30 = vpop.f32.mrf.mxu0  ;;  %v662_v32 = vshll.u32 %v3082_v19, 16  ;;  %v761_v24 = vld [vmem:[#allocation2 + $0x38] sm:$0xf] }
  0xf7   : > { %v661_v31 = vrot.slane %v659_v25, 7  ;;  %v643_v33 = vshrl.u32 %v3080_v26, 16  ;;  %v3083_v34 = vpack.c.bf16 %v535_v27, %v535_v27  ;;  %v646_v38 = vshll.u32 %v3080_v26, 16 }
  0xf8   : > { %v533_v39 = vmax.f32 %v525_v28, 0.0  ;;  %v530_v40 = vadd.f32 %v3812_v8, %v515_v29  ;;  %v513_v41 = vmul.f32 %v3807_v6, %v487_v30  ;;  %v3307_v42 = vpop.f32.mrf.mxu0  ;;  %v764_v29 = vld [vmem:[#allocation2 + $0x3c] sm:$0x1]  ;;  %v749_v30 = vld [vmem:[#allocation2 + $0x28] sm:$0xf] }
  0xf9   : > { %v664_v44 = vor.u32 %v662_v32, %v661_v31  ;;  %v665_v45 = vrot.slane %v661_v31, 4  ;;  %v645_v46 = vrot.slane %v643_v33, 7  ;;  %v667_v47 = vshrl.u32 %v3083_v34, 16  ;;  %v752_v31 = vld [vmem:[#allocation2 + $0x2c] sm:$0x1] }
  0xfa   : > { %v670_v50 = vshll.u32 %v3083_v34, 16  ;;  %v3081_v51 = vpack.c.bf16 %v533_v39, %v533_v39  ;;  %v538_v52 = vmax.f32 %v530_v40, 0.0  ;;  %v528_v53 = vadd.f32 %v3812_v8, %v513_v41  ;;  %v490_v62 = vpop.f32.mrf.mxu0 }
  0xfb   : > { %v738_v54 = vsel %vm3824_vm12, %v664_v44, %v737_v36  ;;  %v741_v55 = vsel %vm3637_vm3, %v665_v45, %v740_v37  ;;  %v648_v56 = vor.u32 %v646_v38, %v645_v46  ;;  %v649_v57 = vrot.slane %v645_v46, 4 }
  0xfc   : > { %739 = vst [vmem:[#allocation2 + $0x18] sm:$0xf] %v738_v54  ;;  %742 = vst [vmem:[#allocation2 + $0x1c] sm:$0x1] %v741_v55  ;;  %v669_v58 = vrot.slane %v667_v47, 7  ;;  %v651_v59 = vshrl.u32 %v3081_v51, 16  ;;  %v3086_v61 = vpack.c.bf16 %v538_v52, %v538_v52  ;;  %v516_v4 = vmul.f32 %v3307_v42, %v3807_v6 }
  0xfd   : > { %v654_v60 = vshll.u32 %v3081_v51, 16  ;;  %v726_v63 = vsel %vm3824_vm12, %v648_v56, %v725_v48  ;;  %v729_v0 = vsel %vm3637_vm3, %v649_v57, %v728_v49  ;;  %v536_v3 = vmax.f32 %v528_v53, 0.0  ;;  %v767_v57 = vld [vmem:[#allocation2 + $0x40] sm:$0xf] }
  0xfe   : > { %727 = vst [vmem:[#allocation2 + $0x8] sm:$0xf] %v726_v63  ;;  %730 = vst [vmem:[#allocation2 + $0xc] sm:$0x1] %v729_v0  ;;  %v672_v5 = vor.u32 %v670_v50, %v669_v58  ;;  %v673_v7 = vrot.slane %v669_v58, 4  ;;  %v653_v9 = vrot.slane %v651_v59, 7  ;;  %v531_v15 = vadd.f32 %v3812_v8, %v516_v4 }
  0xff   : > { %v691_v10 = vshrl.u32 %v3086_v61, 16  ;;  %v694_v13 = vshll.u32 %v3086_v61, 16  ;;  %v3084_v14 = vpack.c.bf16 %v536_v3, %v536_v3  ;;  %v514_v16 = vmul.f32 %v3807_v6, %v490_v62  ;;  %v770_v58 = vld [vmem:[#allocation2 + $0x44] sm:$0x1] }
 0x100   : > { %v744_v18 = vsel %vm3824_vm12, %v672_v5, %v743_v1  ;;  %v747_v19 = vsel %vm3637_vm3, %v673_v7, %v746_v2  ;;  %v656_v21 = vor.u32 %v654_v60, %v653_v9  ;;  %v657_v22 = vrot.slane %v653_v9, 4  ;;  %v755_v7 = vld [vmem:[#allocation2 + $0x30] sm:$0xf]  ;;  %v758_v9 = vld [vmem:[#allocation2 + $0x34] sm:$0x1] }
 0x101   : > { %745 = vst [vmem:[#allocation2 + $0x20] sm:$0xf] %v744_v18  ;;  %748 = vst [vmem:[#allocation2 + $0x24] sm:$0x1] %v747_v19  ;;  %v693_v23 = vrot.slane %v691_v10, 7  ;;  %v675_v25 = vshrl.u32 %v3084_v14, 16  ;;  %v529_v32 = vadd.f32 %v3812_v8, %v514_v16 }
 0x102   : > { %v678_v26 = vshll.u32 %v3084_v14, 16  ;;  %v539_v27 = vmax.f32 %v531_v15, 0.0  ;;  %v732_v28 = vsel %vm3824_vm12, %v656_v21, %v731_v11  ;;  %v735_v6 = vsel %vm3637_vm3, %v657_v22, %v734_v12 }
 0x103   : > { %733 = vst [vmem:[#allocation2 + $0x10] sm:$0xf] %v732_v28  ;;  %736 = vst [vmem:[#allocation2 + $0x14] sm:$0x1] %v735_v6  ;;  %v696_v33 = vor.u32 %v694_v13, %v693_v23  ;;  %v697_v34 = vrot.slane %v693_v23, 4  ;;  %v677_v36 = vrot.slane %v675_v25, 7 }
 0x104   : > { %v3087_v37 = vpack.c.bf16 %v539_v27, %v539_v27  ;;  %v942_v38 = vld [vmem:[#allocation2 + $0x18] sm:$0xe]  ;;  %v943_v39 = vld [vmem:[#allocation2 + $0x1c] sm:$0x1]  ;;  %v537_v40 = vmax.f32 %v529_v32, 0.0 }
 0x105   : > { %v2935_v41 = vrot.slane %v942_v38, 9  ;;  %v985_v42 = vrot.slane %v943_v39, 5  ;;  %v1021_v44 = vld [vmem:[#allocation2 + $0x18] sm:$0xf]  ;;  %v762_v45 = vsel %vm3824_vm12, %v696_v33, %v761_v24  ;;  %v765_v46 = vsel %vm3637_vm3, %v697_v34, %v764_v29  ;;  %v938_v48 = vld [vmem:[#allocation2 + $0x8] sm:$0xe] }
 0x106   : > { %v680_v47 = vor.u32 %v678_v26, %v677_v36  ;;  %v681_v8 = vrot.slane %v677_v36, 4  ;;  %v939_v49 = vld [vmem:[#allocation2 + $0xc] sm:$0x1]  ;;  %1029 = vst [vmem:[#allocation3 + $0x54] sm:$0xf] %v1021_v44  ;;  %v699_v50 = vshrl.u32 %v3087_v37, 16  ;;  %v3085_v52 = vpack.c.bf16 %v537_v40, %v537_v40 }
 0x107   : > { %763 = vst [vmem:[#allocation2 + $0x38] sm:$0xf] %v762_v45  ;;  %766 = vst [vmem:[#allocation2 + $0x3c] sm:$0x1] %v765_v46  ;;  %v702_v51 = vshll.u32 %v3087_v37, 16  ;;  %v2933_v53 = vrot.slane %v938_v48, 9  ;;  %v986_v60 = vsel %vm3738_vm7, %v2935_v41, %v985_v42 }
 0x108   : > { %v1019_v54 = vld [vmem:[#allocation2 + $0x8] sm:$0xf]  ;;  %v750_v55 = vsel %vm3824_vm12, %v680_v47, %v749_v30  ;;  %v753_v56 = vsel %vm3637_vm3, %v681_v8, %v752_v31  ;;  %v977_v59 = vrot.slane %v939_v49, 5  ;;  %v1424_v63 = vld [vmem:[#allocation2 + $0x20] sm:$0xe]  ;;  %v701_v1 = vrot.slane %v699_v50, 7 }
 0x109   : > { %1027 = vst [vmem:[#allocation3 + $0xc] sm:$0xf] %v1019_v54  ;;  %v774_v61 = vld [vmem:[#allocation2 + $0x8] sm:$0xf]  ;;  %v1425_v0 = vld [vmem:[#allocation2 + $0x24] sm:$0x1] }
 0x10a   : > { %v791_v62 = vld [vmem:[#allocation2 + $0x8] sm:$0xf]  ;;  %751 = vst [vmem:[#allocation2 + $0x28] sm:$0xf] %v750_v55  ;;  %754 = vst [vmem:[#allocation2 + $0x2c] sm:$0x1] %v753_v56  ;;  %v978_v10 = vsel %vm3738_vm7, %v2933_v53, %v977_v59  ;;  %v704_v12 = vor.u32 %v702_v51, %v701_v1 }
 0x10b   : > { %v683_v2 = vshrl.u32 %v3085_v52, 16  ;;  %1014 = vst [vmem:[#allocation3 + $0x74] sm:$0xf] %v986_v60  ;;  %782 = vst [vmem:[#allocation3 + $0x24] sm:$0xf] %v774_v61  ;;  %v2950_v3 = vrot.slane %v1424_v63, 9 }
 0x10c   : > { %v1462_v4 = vrot.slane %v1425_v0, 5  ;;  %v686_v5 = vshll.u32 %v3085_v52, 16  ;;  %v1022_v11 = vld [vmem:[#allocation2 + $0x20] sm:$0xf]  ;;  %v705_v13 = vrot.slane %v701_v1, 4  ;;  %v823_v22 = vshrl.u32 %v791_v62, 16 }
 0x10d   : > { %v685_v14 = vrot.slane %v683_v2, 7  ;;  %1012 = vst [vmem:[#allocation3 + $0x2c] sm:$0xf] %v978_v10  ;;  %v1020_v15 = vld [vmem:[#allocation2 + $0x10] sm:$0xf]  ;;  %v768_v24 = vsel %vm3824_vm12, %v704_v12, %v767_v57  ;;  %v826_v31 = vshll.u32 %v791_v62, 16 }
 0x10e   : > { %v940_v16 = vld [vmem:[#allocation2 + $0x10] sm:$0xe]  ;;  %1030 = vst [vmem:[#allocation3 + $0x78] sm:$0xf] %v1022_v11  ;;  %1028 = vst [vmem:[#allocation3 + $0x30] sm:$0xf] %v1020_v15  ;;  %v1463_v23 = vsel %vm3738_vm7, %v2950_v3, %v1462_v4  ;;  %v771_v25 = vsel %vm3637_vm3, %v705_v13, %v770_v58 }
 0x10f   : > { %v941_v18 = vld [vmem:[#allocation2 + $0x14] sm:$0x1]  ;;  %v2934_v19 = vrot.slane %v940_v16, 9  ;;  %v792_v21 = vld [vmem:[#allocation2 + $0xc] sm:$0x1]  ;;  %v688_v26 = vor.u32 %v686_v5, %v685_v14  ;;  %v689_v27 = vrot.slane %v685_v14, 4 }
 0x110   : > { %v775_v28 = vld [vmem:[#allocation2 + $0x10] sm:$0xf]  ;;  %v776_v6 = vld [vmem:[#allocation2 + $0x18] sm:$0xf]  ;;  %1494 = vst [vmem:[#allocation3 + $0x68] sm:$0xf] %v1463_v23 }
 0x111   : > { %769 = vst [vmem:[#allocation2 + $0x40] sm:$0xf] %v768_v24  ;;  %772 = vst [vmem:[#allocation2 + $0x44] sm:$0x1] %v771_v25  ;;  %v981_v29 = vrot.slane %v941_v18, 5  ;;  %v825_v30 = vrot.slane %v823_v22, 4  ;;  %v756_v33 = vsel %vm3824_vm12, %v688_v26, %v755_v7  ;;  %v759_v34 = vsel %vm3637_vm3, %v689_v27, %v758_v9 }
 0x112   : > { %783 = vst [vmem:[#allocation3 + $0x48] sm:$0xf] %v775_v28  ;;  %784 = vst [vmem:[#allocation3 + $0x6c] sm:$0xf] %v776_v6  ;;  %v793_v32 = vld [vmem:[#allocation2 + $0x10] sm:$0xf] }
 0x113   : > { %v794_v36 = vld [vmem:[#allocation2 + $0x14] sm:$0x1]  ;;  %v795_v37 = vld [vmem:[#allocation2 + $0x18] sm:$0xf]  ;;  %v837_v38 = vshrl.u32 %v793_v32, 16  ;;  %v982_v41 = vsel %vm3738_vm7, %v2934_v19, %v981_v29  ;;  %v828_v42 = vrot.slane %v826_v31, 5 }
 0x114   : > { %v1426_v39 = vld [vmem:[#allocation2 + $0x28] sm:$0xe]  ;;  %v1427_v40 = vld [vmem:[#allocation2 + $0x2c] sm:$0x1]  ;;  %757 = vst [vmem:[#allocation2 + $0x30] sm:$0xf] %v756_v33 }
 0x115   : > { %760 = vst [vmem:[#allocation2 + $0x34] sm:$0x1] %v759_v34  ;;  %v832_v44 = vshll.u32 %v792_v21, 16  ;;  %v2951_v45 = vrot.slane %v1426_v39, 9  ;;  %v1466_v46 = vrot.slane %v1427_v40, 5  ;;  %v839_v47 = vrot.slane %v837_v38, 4 }
 0x116   : > { %1013 = vst [vmem:[#allocation3 + $0x50] sm:$0xf] %v982_v41  ;;  %v796_v20 = vld [vmem:[#allocation2 + $0x1c] sm:$0x1]  ;;  %v840_v8 = vshll.u32 %v793_v32, 16  ;;  %v829_v48 = vor.u32 %v828_v42, %v825_v30  ;;  %v3432_v49 = vld [vmem:[%s4199_s4 + $0x1f0] sm:$0xff]  }
 0x117   : > { %v846_v50 = vshll.u32 %v794_v36, 16  ;;  %v851_v51 = vshrl.u32 %v795_v37, 16  ;;  %v854_v52 = vshll.u32 %v795_v37, 16  ;;  %v944_v53 = vld [vmem:[#allocation2 + $0x20] sm:$0xe]  ;;  %v1467_v57 = vsel %vm3738_vm7, %v2951_v45, %v1466_v46  ;;  %v3434_v63 = vld [vmem:[%s4199_s4 + $0x1b0] sm:$0xff]  }
 0x118   : > { %v3419_v54 = vld [vmem:[#allocation3 + $0x8] ss:$36 sps:$4 sm:$0xff]   ;;  %v842_v56 = vrot.slane %v840_v8, 5  ;;  %v830_v58 = vrot.slane %v829_v48, 4  ;;  %v834_v59 = vrot.slane %v832_v44, 5  ;;  %v860_v1 = vshll.u32 %v796_v20, 16 }
 0x119   : > { %v3421_v55 = vld [vmem:[#allocation3 + $0xc] ss:$36 sps:$4 sm:$0xff]   ;;  %v853_v60 = vrot.slane %v851_v51, 4  ;;  %v856_v61 = vrot.slane %v854_v52, 5  ;;  %v945_v62 = vld [vmem:[#allocation2 + $0x24] sm:$0x1] }
 0x11a   : > { %1495 = vst [vmem:[#allocation3 + $0x8c] sm:$0xf] %v1467_v57  ;;  %2397 = vmatprep.mubr.bf16.mxu0 %v3421_v55  ;;  %v843_v0 = vor.u32 %v842_v56, %v839_v47  ;;  %v946_v2 = vld [vmem:[#allocation2 + $0x28] sm:$0xe]  ;;  %v947_v3 = vld [vmem:[#allocation2 + $0x2c] sm:$0x1]  ;;  %v835_v5 = vsel %vm3774_vm10, %v830_v58, %v834_v59 }
 0x11b   : > { %v2936_v4 = vrot.slane %v944_v53, 9  ;;  %2398 = vmatmul.mubr.bf16.vlgmr.msra.gmra.mxu0 %v3419_v54  ;;  %v857_v7 = vor.u32 %v856_v61, %v853_v60  ;;  %v3438_v9 = vld [vmem:[%s4199_s4 + $0x1e8] sm:$0xff]   ;;  %v989_v10 = vrot.slane %v945_v62, 5  ;;  %v2937_v11 = vrot.slane %v946_v2, 9  ;;  %v777_v13 = vld [vmem:[#allocation2 + $0x20] sm:$0xf] }
 0x11c   : > { %v1023_v12 = vld [vmem:[#allocation2 + $0x28] sm:$0xf]  ;;  %3221 = vmatpush3.bf16.msra.mxu0 %v3425_v35  ;;  %929 = vst [vmem:[#allocation3 + $0x28] sm:$0xf] %v835_v5  ;;  %v844_v14 = vrot.slane %v843_v0, 4  ;;  %v848_v15 = vrot.slane %v846_v50, 5 }
 0x11d   : > { %v862_v16 = vrot.slane %v860_v1, 5  ;;  %v993_v18 = vrot.slane %v947_v3, 5  ;;  %v1024_v19 = vld [vmem:[#allocation2 + $0x30] sm:$0xf]  ;;  %1031 = vst [vmem:[#allocation3 + $0x9c] sm:$0xf] %v1023_v12  ;;  %3222 = vmatprep.subr.bf16.mxu0 %v3432_v49  ;;  %v990_v24 = vsel %vm3738_vm7, %v2936_v4, %v989_v10 }
 0x11e   : > { %785 = vst [vmem:[#allocation3 + $0x90] sm:$0xf] %v777_v13  ;;  %v1511_v21 = vld [vmem:[#allocation3 + $0x50] sm:$0xff]  ;;  %v858_v23 = vrot.slane %v857_v7, 4  ;;  %1032 = vst [vmem:[#allocation3 + $0xc0] sm:$0xf] %v1024_v19  ;;  %v849_v26 = vsel %vm3774_vm10, %v844_v14, %v848_v15 }
 0x11f   : > { %v3426_v22 = vld [vmem:[#allocation3 + $0x54] ss:$36 sps:$4 sm:$0xff]   ;;  %v994_v27 = vsel %vm3738_vm7, %v2937_v11, %v993_v18  ;;  %1015 = vst [vmem:[#allocation3 + $0x98] sm:$0xf] %v990_v24  ;;  %v797_v28 = vld [vmem:[#allocation2 + $0x20] sm:$0xf] }
 0x120   : > { %v778_v25 = vld [vmem:[#allocation2 + $0x28] sm:$0xf]  ;;  %v798_v6 = vld [vmem:[#allocation2 + $0x24] sm:$0x1]  ;;  %2405 = vmatprep.mubr.bf16.mxu0 %v3426_v22  ;;  %v863_v31 = vsel %vm3774_vm10, %v858_v23, %v862_v16  ;;  %930 = vst [vmem:[#allocation3 + $0x4c] sm:$0xf] %v849_v26  ;;  %3223 = vmatpush3.bf16.msra.mxu0 %v3434_v63 }
 0x121   : > { %786 = vst [vmem:[#allocation3 + $0xb4] sm:$0xf] %v778_v25  ;;  %v799_v29 = vld [vmem:[#allocation2 + $0x28] sm:$0xf]  ;;  %1016 = vst [vmem:[#allocation3 + $0xbc] sm:$0xf] %v994_v27  ;;  %3224 = vmatprep.subr.bf16.mxu0 %v3438_v9 }
 0x122   : > { %v1516_v30 = vld [vmem:[#allocation3 + $0x74] sm:$0xff]  ;;  %v800_v33 = vld [vmem:[#allocation2 + $0x2c] sm:$0x1]  ;;  %v865_v34 = vshrl.u32 %v797_v28, 16  ;;  %v868_v36 = vshll.u32 %v797_v28, 16  ;;  %v879_v39 = vshrl.u32 %v799_v29, 16 }
 0x123   : > { %v3442_v32 = vld [vmem:[%s4199_s4 + $0x1a8] sm:$0xff]   ;;  %931 = vst [vmem:[#allocation3 + $0x70] sm:$0xf] %v863_v31  ;;  %v2967_v37 = vcombine.low %v1511_v21, %v1516_v30  ;;  %v3444_v38 = vld [vmem:[%s4199_s4 + $0x1e0] sm:$0xff]   ;;  %v882_v40 = vshll.u32 %v799_v29, 16  ;;  %v888_v41 = vshll.u32 %v800_v33, 16 }
 0x124   : > { %v948_v42 = vld [vmem:[#allocation2 + $0x30] sm:$0xe]  ;;  %v3433_v44 = vld [vmem:[%s4199_s4 + $0x138] sm:$0xff]   ;;  %v867_v45 = vrot.slane %v865_v34, 4  ;;  %v870_v46 = vrot.slane %v868_v36, 5  ;;  %v874_v35 = vshll.u32 %v798_v6, 16  ;;  %3225 = vmatpush3.bf16.msra.mxu0 %v3442_v32 }
 0x125   : > { %v949_v20 = vld [vmem:[#allocation2 + $0x34] sm:$0x1]  ;;  %v2938_v47 = vrot.slane %v948_v42, 9  ;;  %v881_v48 = vrot.slane %v879_v39, 4  ;;  %v884_v49 = vrot.slane %v882_v40, 5  ;;  %v890_v50 = vrot.slane %v888_v41, 5  ;;  %2406 = vmatmul.mubr.bf16.gmra.mxu0 %v2967_v37  ;;  %3226 = vmatprep.subr.bf16.mxu0 %v3444_v38 }
 0x126   : > { %v3437_v8 = vld [vmem:[%s4199_s4 + $0x170] sm:$0xff]   ;;  %v950_v51 = vld [vmem:[#allocation2 + $0x38] sm:$0xe]  ;;  %v997_v52 = vrot.slane %v949_v20, 5  ;;  %v3447_v55 = vld [vmem:[%s4199_s4 + $0x1a0] sm:$0xff]   ;;  %v871_v56 = vor.u32 %v870_v46, %v867_v45  ;;  %v876_v1 = vrot.slane %v874_v35, 5 }
 0x127   : > { %v3428_v53 = vld [vmem:[#allocation3] ss:$36 sps:$4 sm:$0xff]   ;;  %v2939_v57 = vrot.slane %v950_v51, 9  ;;  %v885_v58 = vor.u32 %v884_v49, %v881_v48  ;;  %v951_v59 = vld [vmem:[#allocation2 + $0x3c] sm:$0x1]  ;;  %v3443_v9 = vld [vmem:[%s4199_s4 + $0x168] sm:$0xff]  }
 0x128   : > { %v3430_v54 = vld [vmem:[#allocation3 + $0x4] ss:$36 sps:$4 sm:$0xff]   ;;  %v998_v60 = vsel %vm3738_vm7, %v2938_v47, %v997_v52  ;;  %v1026_v62 = vld [vmem:[#allocation2 + $0x40] sm:$0xf]  ;;  %v872_v0 = vrot.slane %v871_v56, 4  ;;  %v1001_v3 = vrot.slane %v951_v59, 5  ;;  %3227 = vmatpush3.bf16.msra.mxu0 %v3447_v55 }
 0x129   : > { %v1025_v61 = vld [vmem:[#allocation2 + $0x38] sm:$0xf]  ;;  %2332 = vmatprep.mubr.bf16.mxu1 %v3430_v54  ;;  %v3441_v63 = vld [vmem:[%s4199_s4 + $0x130] sm:$0xff]   ;;  %1017 = vst [vmem:[#allocation3 + $0xe0] sm:$0xf] %v998_v60  ;;  %v886_v10 = vrot.slane %v885_v58, 4 }
 0x12a   : > { %v3451_v2 = vld [vmem:[%s4199_s4 + $0x1d8] sm:$0xff]   ;;  %1033 = vst [vmem:[#allocation3 + $0xe4] sm:$0xf] %v1025_v61  ;;  %1034 = vst [vmem:[#allocation3 + $0x108] sm:$0xf] %v1026_v62  ;;  %2333 = vmatmul.mubr.bf16.vlgmr.msra.gmra.mxu1 %v3428_v53  ;;  %v1526_v5 = vld [vmem:[#allocation3 + $0xbc] sm:$0xff]  ;;  %v877_v13 = vsel %vm3774_vm10, %v872_v0, %v876_v1  ;;  %v1002_v14 = vsel %vm3738_vm7, %v2939_v57, %v1001_v3 }
 0x12b   : > { %v779_v4 = vld [vmem:[#allocation2 + $0x30] sm:$0xf]  ;;  %3181 = vmatpush3.bf16.msra.mxu1 %v3433_v44  ;;  %v3435_v11 = vld [vmem:[#allocation3 + $0x4c] ss:$36 sps:$4 sm:$0xff]   ;;  %v1521_v12 = vld [vmem:[#allocation3 + $0x98] sm:$0xff]  ;;  %v891_v16 = vsel %vm3774_vm10, %v886_v10, %v890_v50  ;;  %3228 = vmatprep.subr.bf16.mxu0 %v3451_v2 }
 0x12c   : > { %v3439_v7 = vld [vmem:[#allocation3 + $0x9c] ss:$36 sps:$4 sm:$0xff]   ;;  %787 = vst [vmem:[#allocation3 + $0xd8] sm:$0xf] %v779_v4  ;;  %v3455_v15 = vld [vmem:[%s4199_s4 + $0x198] sm:$0xff]   ;;  %3182 = vmatprep.subr.bf16.mxu1 %v3437_v8  ;;  %2340 = vmatprep.mubr.bf16.mxu1 %v3435_v11  ;;  %v2976_v24 = vcombine.low %v1521_v12, %v1526_v5  ;;  %v3450_v6 = vld [vmem:[%s4199_s4 + $0x160] sm:$0xff]  }
 0x12d   : > { %2413 = vmatprep.mubr.bf16.mxu0 %v3439_v7  ;;  %932 = vst [vmem:[#allocation3 + $0x94] sm:$0xf] %v877_v13  ;;  %1018 = vst [vmem:[#allocation3 + $0x104] sm:$0xf] %v1002_v14  ;;  %v3457_v18 = vld [vmem:[%s4199_s4 + $0x1d0] sm:$0xff]   ;;  %v3446_v23 = vld [vmem:[%s4199_s4 + $0x128] sm:$0xff]   ;;  %3229 = vmatpush3.bf16.msra.mxu0 %v3455_v15 }
 0x12e   : > { %v780_v19 = vld [vmem:[#allocation2 + $0x38] sm:$0xf]  ;;  %v801_v21 = vld [vmem:[#allocation2 + $0x30] sm:$0xf]  ;;  %v802_v22 = vld [vmem:[#allocation2 + $0x34] sm:$0x1]  ;;  %2414 = vmatmul.mubr.bf16.gmra.mxu0 %v2976_v24  ;;  %3230 = vmatprep.subr.bf16.mxu0 %v3457_v18 }
 0x12f   : > { %933 = vst [vmem:[#allocation3 + $0xb8] sm:$0xf] %v891_v16  ;;  %788 = vst [vmem:[#allocation3 + $0xfc] sm:$0xf] %v780_v19  ;;  %v803_v25 = vld [vmem:[#allocation2 + $0x38] sm:$0xf]  ;;  %3183 = vmatpush3.bf16.msra.mxu1 %v3441_v63 }
 0x130   : > { %v804_v26 = vld [vmem:[#allocation2 + $0x3c] sm:$0x1]  ;;  %v893_v27 = vshrl.u32 %v801_v21, 16  ;;  %v896_v28 = vshll.u32 %v801_v21, 16  ;;  %v902_v29 = vshll.u32 %v802_v22, 16  ;;  %v907_v30 = vshrl.u32 %v803_v25, 16  ;;  %3184 = vmatprep.subr.bf16.mxu1 %v3443_v9 }
 0x131   : > { %v910_v31 = vshll.u32 %v803_v25, 16  ;;  %v916_v32 = vshll.u32 %v804_v26, 16  ;;  %v1260_v33 = vld [vmem:[#allocation2 + $0x10] sm:$0xf]  ;;  %v1261_v38 = vld [vmem:[#allocation2 + $0x18] sm:$0xf] }
 0x132   : > { %v3460_v34 = vld [vmem:[%s4199_s4 + $0x190] sm:$0xff]   ;;  %v895_v36 = vrot.slane %v893_v27, 4  ;;  %v898_v37 = vrot.slane %v896_v28, 5  ;;  %1268 = vst [vmem:[#allocation3 + $0x18] sm:$0xf] %v1260_v33  ;;  %v909_v42 = vrot.slane %v907_v30, 4 }
 0x133   : > { %v1276_v39 = vld [vmem:[#allocation2 + $0x10] sm:$0xf]  ;;  %v3445_v40 = vld [vmem:[#allocation3 + $0x48] ss:$36 sps:$4 sm:$0xff]   ;;  %v912_v44 = vrot.slane %v910_v31, 5  ;;  %v3464_v45 = vld [vmem:[%s4199_s4 + $0x1c8] sm:$0xff]   ;;  %3185 = vmatpush3.bf16.msra.mxu1 %v3446_v23  ;;  %3231 = vmatpush3.bf16.msra.mxu0 %v3460_v34 }
 0x134   : > { %v1531_v41 = vld [vmem:[#allocation3 + $0xe0] sm:$0xff]  ;;  %1269 = vst [vmem:[#allocation3 + $0x3c] sm:$0xf] %v1261_v38  ;;  %v3454_v46 = vld [vmem:[%s4199_s4 + $0x120] sm:$0xff]   ;;  %v899_v35 = vor.u32 %v898_v37, %v895_v36  ;;  %v904_v20 = vrot.slane %v902_v29, 5  ;;  %v918_v47 = vrot.slane %v916_v32, 5  ;;  %2341 = vmatmul.mubr.bf16.gmra.mxu1 %v3445_v40  ;;  %3186 = vmatprep.subr.bf16.mxu1 %v3450_v6 }
 0x135   : > { %v1277_v8 = vld [vmem:[#allocation2 + $0x14] sm:$0x1]  ;;  %v1278_v48 = vld [vmem:[#allocation2 + $0x18] sm:$0xf]  ;;  %v913_v50 = vor.u32 %v912_v44, %v909_v42  ;;  %v1279_v51 = vld [vmem:[#allocation2 + $0x1c] sm:$0x1]  ;;  %3232 = vmatprep.subr.bf16.mxu0 %v3464_v45 }
 0x136   : > { %v3456_v49 = vld [vmem:[%s4199_s4 + $0x158] sm:$0xff]   ;;  %v1293_v52 = vshrl.u32 %v1276_v39, 16  ;;  %v1296_v53 = vshll.u32 %v1276_v39, 16  ;;  %v1035_v54 = vld [vmem:[#allocation2 + $0x8] sm:$0xf]  ;;  %v900_v56 = vrot.slane %v899_v35, 4 }
 0x137   : > { %v3452_v55 = vld [vmem:[#allocation3 + $0xe4] ss:$36 sps:$4 sm:$0xff]   ;;  %v1302_v57 = vshll.u32 %v1277_v8, 16  ;;  %v1307_v58 = vshrl.u32 %v1278_v48, 16  ;;  %v3448_v59 = vld [vmem:[#allocation3 + $0x94] ss:$36 sps:$4 sm:$0xff]   ;;  %3187 = vmatpush3.bf16.msra.mxu1 %v3454_v46 }
 0x138   : > { %v1536_v60 = vld [vmem:[#allocation3 + $0x104] sm:$0xff]  ;;  %v914_v61 = vrot.slane %v913_v50, 4  ;;  %2421 = vmatprep.mubr.bf16.mxu0 %v3452_v55  ;;  %v905_v63 = vsel %vm3774_vm10, %v900_v56, %v904_v20  ;;  %v3466_v1 = vld [vmem:[%s4199_s4 + $0x188] sm:$0xff]   ;;  %v1295_v2 = vrot.slane %v1293_v52, 4  ;;  %v1298_v3 = vrot.slane %v1296_v53, 5  ;;  %2348 = vmatprep.mubr.bf16.mxu1 %v3448_v59  ;;  %v3471_v13 = vld [vmem:[%s4199_s4 + $0x1c0] sm:$0xff]  }
 0x139   : > { %v3459_v62 = vld [vmem:[%s4199_s4 + $0x118] sm:$0xff]   ;;  %v2985_v0 = vcombine.low %v1531_v41, %v1536_v60  ;;  %v1036_v4 = vld [vmem:[#allocation2 + $0xc] sm:$0x1]  ;;  %v3458_v5 = vld [vmem:[#allocation3 + $0x90] ss:$36 sps:$4 sm:$0xff]   ;;  %v1309_v10 = vrot.slane %v1307_v58, 4  ;;  %3188 = vmatprep.subr.bf16.mxu1 %v3456_v49  ;;  %3233 = vmatpush3.bf16.msra.mxu0 %v3466_v1 }
 0x13a   : > { %v919_v7 = vsel %vm3774_vm10, %v914_v61, %v918_v47  ;;  %934 = vst [vmem:[#allocation3 + $0xdc] sm:$0xf] %v905_v63  ;;  %v3463_v9 = vld [vmem:[%s4199_s4 + $0x150] sm:$0xff]   ;;  %v1310_v11 = vshll.u32 %v1278_v48, 16  ;;  %v1316_v12 = vshll.u32 %v1279_v51, 16  ;;  %v1299_v15 = vor.u32 %v1298_v3, %v1295_v2  ;;  %v3474_v18 = vld [vmem:[%s4199_s4 + $0x180] sm:$0xff]   ;;  %3234 = vmatprep.subr.bf16.mxu0 %v3471_v13 }
 0x13b   : > { %v1037_v14 = vld [vmem:[#allocation2 + $0x10] sm:$0xf]  ;;  %935 = vst [vmem:[#allocation3 + $0x100] sm:$0xf] %v919_v7  ;;  %2422 = vmatmul.mubr.bf16.gmra.mxu0 %v2985_v0  ;;  %v1304_v16 = vrot.slane %v1302_v57, 5  ;;  %v1052_v21 = vshrl.u32 %v1035_v54, 16  ;;  %3189 = vmatpush3.bf16.msra.mxu1 %v3459_v62 }
 0x13c   : > { %v1038_v19 = vld [vmem:[#allocation2 + $0x14] sm:$0x1]  ;;  %v1055_v22 = vshll.u32 %v1035_v54, 16  ;;  %v1312_v23 = vrot.slane %v1310_v11, 5  ;;  %v1061_v24 = vshll.u32 %v1036_v4, 16  ;;  %v1066_v25 = vshrl.u32 %v1037_v14, 16  ;;  %2349 = vmatmul.mubr.bf16.gmra.mxu1 %v3458_v5  ;;  %3190 = vmatprep.subr.bf16.mxu1 %v3463_v9 }
 0x13d   : > { %v1069_v26 = vshll.u32 %v1037_v14, 16  ;;  %v1179_v27 = vld [vmem:[#allocation2 + $0x8] sm:$0xe]  ;;  %v1300_v28 = vrot.slane %v1299_v15, 4  ;;  %v1318_v6 = vrot.slane %v1316_v12, 5  ;;  %v1054_v29 = vrot.slane %v1052_v21, 4  ;;  %3235 = vmatpush3.bf16.msra.mxu0 %v3474_v18 }
 0x13e   : > { %v1057_v30 = vrot.slane %v1055_v22, 5  ;;  %v1180_v31 = vld [vmem:[#allocation2 + $0xc] sm:$0x1]  ;;  %v3465_v32 = vld [vmem:[%s4199_s4 + $0x110] sm:$0xff]   ;;  %v1313_v33 = vor.u32 %v1312_v23, %v1309_v10  ;;  %v1068_v34 = vrot.slane %v1066_v25, 4  ;;  %v1075_v37 = vshll.u32 %v1038_v19, 16  ;;  %3332 = vmatprep.subr.bf16.mxu0 %v3507_v17 }
 0x13f   : > { %v1071_v36 = vrot.slane %v1069_v26, 5  ;;  %v1181_v38 = vld [vmem:[#allocation2 + $0x10] sm:$0xe]  ;;  %v1305_v39 = vsel %vm3774_vm10, %v1300_v28, %v1304_v16  ;;  %v1182_v41 = vld [vmem:[#allocation2 + $0x14] sm:$0x1]  ;;  %v2940_v42 = vrot.slane %v1179_v27, 9  ;;  %3191 = vmatpush3.bf16.msra.mxu1 %v3465_v32 }
 0x140   : > { %v1058_v40 = vor.u32 %v1057_v30, %v1054_v29  ;;  %v1213_v44 = vrot.slane %v1180_v31, 5  ;;  %v1262_v45 = vld [vmem:[#allocation2 + $0x20] sm:$0xf]  ;;  %v1314_v46 = vrot.slane %v1313_v33, 4  ;;  %1412 = vst [vmem:[#allocation3 + $0x1c] sm:$0xf] %v1305_v39 }
 0x141   : > { %v3470_v35 = vld [vmem:[%s4199_s4 + $0x148] sm:$0xff]   ;;  %v1063_v20 = vrot.slane %v1061_v24, 5  ;;  %v1072_v47 = vor.u32 %v1071_v36, %v1068_v34  ;;  %v2941_v8 = vrot.slane %v1181_v38, 9  ;;  %1270 = vst [vmem:[#allocation3 + $0x60] sm:$0xf] %v1262_v45  ;;  %v1077_v51 = vrot.slane %v1075_v37, 5 }
 0x142   : > { %v1263_v48 = vld [vmem:[#allocation2 + $0x28] sm:$0xf]  ;;  %v1059_v50 = vrot.slane %v1058_v40, 4  ;;  %v1214_v52 = vsel %vm3738_vm7, %v2940_v42, %v1213_v44  ;;  %v1217_v53 = vrot.slane %v1182_v41, 5  ;;  %v1280_v54 = vld [vmem:[#allocation2 + $0x20] sm:$0xf]  ;;  %v1319_v56 = vsel %vm3774_vm10, %v1314_v46, %v1318_v6  ;;  %3192 = vmatprep.subr.bf16.mxu1 %v3470_v35 }
 0x143   : > { %v3473_v49 = vld [vmem:[%s4199_s4 + $0x108] sm:$0xff]   ;;  %1271 = vst [vmem:[#allocation3 + $0x84] sm:$0xf] %v1263_v48  ;;  %v1073_v58 = vrot.slane %v1072_v47, 4  ;;  %1251 = vst [vmem:[#allocation3 + $0x14] sm:$0xf] %v1214_v52 }
 0x144   : > { %v3461_v55 = vld [vmem:[#allocation3 + $0xdc] ss:$36 sps:$4 sm:$0xff]   ;;  %1413 = vst [vmem:[#allocation3 + $0x40] sm:$0xf] %v1319_v56  ;;  %v1064_v59 = vsel %vm3774_vm10, %v1059_v50, %v1063_v20  ;;  %v1218_v60 = vsel %vm3738_vm7, %v2941_v8, %v1217_v53  ;;  %v1281_v61 = vld [vmem:[#allocation2 + $0x24] sm:$0x1]  ;;  %3193 = vmatpush3.bf16.msra.mxu1 %v3473_v49 }
 0x145   : > { %v3472_v57 = vld [vmem:[#allocation3 + $0xd8] ss:$36 sps:$4 sm:$0xff]   ;;  %2356 = vmatprep.mubr.bf16.mxu1 %v3461_v55  ;;  %v1078_v0 = vsel %vm3774_vm10, %v1073_v58, %v1077_v51  ;;  %1171 = vst [vmem:[#allocation3 + $0x10] sm:$0xf] %v1064_v59  ;;  %1252 = vst [vmem:[#allocation3 + $0x38] sm:$0xf] %v1218_v60 }
 0x146   : > { %v1282_v62 = vld [vmem:[#allocation2 + $0x28] sm:$0xf]  ;;  %v1283_v63 = vld [vmem:[#allocation2 + $0x2c] sm:$0x1]  ;;  %v3478_v1 = vld [vmem:[%s4199_s4 + $0x140] sm:$0xff]   ;;  %v1321_v2 = vshrl.u32 %v1280_v54, 16  ;;  %2357 = vmatmul.mubr.bf16.gmra.mxu1 %v3472_v57 }
 0x147   : > { %v1324_v3 = vshll.u32 %v1280_v54, 16  ;;  %v1330_v4 = vshll.u32 %v1281_v61, 16  ;;  %v1039_v5 = vld [vmem:[#allocation2 + $0x18] sm:$0xf]  ;;  %1172 = vst [vmem:[#allocation3 + $0x34] sm:$0xf] %v1078_v0  ;;  %3194 = vmatprep.subr.bf16.mxu1 %v3478_v1 }
 0x148   : > { %v3479_v7 = vld [vmem:[%s4199_s4 + $0x100] sm:$0xff]   ;;  %v1335_v9 = vshrl.u32 %v1282_v62, 16  ;;  %v1338_v10 = vshll.u32 %v1282_v62, 16  ;;  %v1344_v11 = vshll.u32 %v1283_v63, 16  ;;  %v1040_v12 = vld [vmem:[#allocation2 + $0x1c] sm:$0x1] }
 0x149   : > { %v1080_v13 = vshrl.u32 %v1039_v5, 16  ;;  %v1323_v14 = vrot.slane %v1321_v2, 4  ;;  %v1326_v15 = vrot.slane %v1324_v3, 5  ;;  %v1332_v16 = vrot.slane %v1330_v4, 5  ;;  %v1041_v18 = vld [vmem:[#allocation2 + $0x20] sm:$0xf]  ;;  %3195 = vmatpush3.bf16.msra.mxu1 %v3479_v7 }
 0x14a   : > { %v1083_v19 = vshll.u32 %v1039_v5, 16  ;;  %v1337_v21 = vrot.slane %v1335_v9, 4  ;;  %v1340_v22 = vrot.slane %v1338_v10, 5  ;;  %v1346_v23 = vrot.slane %v1344_v11, 5  ;;  %v1042_v24 = vld [vmem:[#allocation2 + $0x24] sm:$0x1] }
 0x14b   : > { %v1327_v25 = vor.u32 %v1326_v15, %v1323_v14  ;;  %v3482_v26 = vld [vmem:[%s4199_s4 + $0x238] sm:$0xff]   ;;  %v1082_v27 = vrot.slane %v1080_v13, 4  ;;  %v1089_v6 = vshll.u32 %v1040_v12, 16  ;;  %v1094_v31 = vshrl.u32 %v1041_v18, 16  ;;  %v3467_v36 = vld [vmem:[#allocation3 + $0x18] ss:$36 sps:$4 sm:$0xff]  }
 0x14c   : > { %v1085_v28 = vrot.slane %v1083_v19, 5  ;;  %v1183_v29 = vld [vmem:[#allocation2 + $0x18] sm:$0xe]  ;;  %v1341_v30 = vor.u32 %v1340_v22, %v1337_v21  ;;  %v1097_v32 = vshll.u32 %v1041_v18, 16  ;;  %v1103_v33 = vshll.u32 %v1042_v24, 16  ;;  %3308 = vmatprep.subr.bf16.mxu1 %v3482_v26  ;;  %v3485_v51 = vld [vmem:[%s4199_s4 + $0x230] sm:$0xff]  }
 0x14d   : > { %v1184_v34 = vld [vmem:[#allocation2 + $0x1c] sm:$0x1]  ;;  %v3469_v37 = vld [vmem:[#allocation3 + $0x1c] ss:$36 sps:$4 sm:$0xff]   ;;  %v1328_v38 = vrot.slane %v1327_v25, 4  ;;  %v1091_v41 = vrot.slane %v1089_v6, 5 }
 0x14e   : > { %v1086_v39 = vor.u32 %v1085_v28, %v1082_v27  ;;  %v1342_v40 = vrot.slane %v1341_v30, 4  ;;  %v1096_v42 = vrot.slane %v1094_v31, 4  ;;  %v1099_v44 = vrot.slane %v1097_v32, 5  ;;  %2527 = vmatprep.mubr.bf16.mxu0 %v3469_v37  ;;  %v3475_v45 = vld [vmem:[#allocation3 + $0x10] ss:$36 sps:$4 sm:$0xff]   ;;  %v3488_v7 = vld [vmem:[%s4199_s4 + $0x228] sm:$0xff]  }
 0x14f   : > { %v3477_v46 = vld [vmem:[#allocation3 + $0x14] ss:$36 sps:$4 sm:$0xff]   ;;  %v1333_v35 = vsel %vm3774_vm10, %v1328_v38, %v1332_v16  ;;  %2528 = vmatmul.mubr.bf16.vlgmr.msra.gmra.mxu0 %v3467_v36  ;;  %v1185_v48 = vld [vmem:[#allocation2 + $0x20] sm:$0xe]  ;;  %v2942_v50 = vrot.slane %v1183_v29, 9  ;;  %v1221_v53 = vrot.slane %v1184_v34, 5 }
 0x150   : > { %v1087_v20 = vrot.slane %v1086_v39, 4  ;;  %v1347_v47 = vsel %vm3774_vm10, %v1342_v40, %v1346_v23  ;;  %1414 = vst [vmem:[#allocation3 + $0x64] sm:$0xf] %v1333_v35  ;;  %v1100_v8 = vor.u32 %v1099_v44, %v1096_v42  ;;  %v1186_v49 = vld [vmem:[#allocation2 + $0x24] sm:$0x1]  ;;  %2462 = vmatprep.mubr.bf16.mxu1 %v3477_v46  ;;  %v2943_v54 = vrot.slane %v1185_v48, 9  ;;  %3333 = vmatpush3.bf16.msra.mxu0 %v3507_v17 }
 0x151   : > { %1415 = vst [vmem:[#allocation3 + $0x88] sm:$0xf] %v1347_v47  ;;  %v1225_v55 = vrot.slane %v1186_v49, 5  ;;  %v1264_v56 = vld [vmem:[#allocation2 + $0x30] sm:$0xf]  ;;  %2463 = vmatmul.mubr.bf16.vlgmr.msra.gmra.mxu1 %v3475_v45  ;;  %v1105_v58 = vrot.slane %v1103_v33, 5  ;;  %v1222_v61 = vsel %vm3738_vm7, %v2942_v50, %v1221_v53 }
 0x152   : > { %v1092_v52 = vsel %vm3774_vm10, %v1087_v20, %v1091_v41  ;;  %v1101_v57 = vrot.slane %v1100_v8, 4  ;;  %v1265_v59 = vld [vmem:[#allocation2 + $0x38] sm:$0xf]  ;;  %1272 = vst [vmem:[#allocation3 + $0xa8] sm:$0xf] %v1264_v56  ;;  %3309 = vmatpush3.bf16.msra.mxu1 %v3482_v26  ;;  %v4025_v22 = vld [vmem:[%s4199_s4 + $0x220] sm:$0xff]  }
 0x153   : > { %1173 = vst [vmem:[#allocation3 + $0x58] sm:$0xf] %v1092_v52  ;;  %v1284_v60 = vld [vmem:[#allocation2 + $0x30] sm:$0xf]  ;;  %v1226_v62 = vsel %vm3738_vm7, %v2943_v54, %v1225_v55  ;;  %1273 = vst [vmem:[#allocation3 + $0xcc] sm:$0xf] %v1265_v59  ;;  %3310 = vmatprep.subr.bf16.mxu1 %v3485_v51 }
 0x154   : > { %v1285_v63 = vld [vmem:[#allocation2 + $0x34] sm:$0x1]  ;;  %v1286_v0 = vld [vmem:[#allocation2 + $0x38] sm:$0xf]  ;;  %v1287_v1 = vld [vmem:[#allocation2 + $0x3c] sm:$0x1]  ;;  %v1106_v2 = vsel %vm3774_vm10, %v1101_v57, %v1105_v58 }
 0x155   : > { %1253 = vst [vmem:[#allocation3 + $0x5c] sm:$0xf] %v1222_v61  ;;  %1254 = vst [vmem:[#allocation3 + $0x80] sm:$0xf] %v1226_v62  ;;  %v1349_v3 = vshrl.u32 %v1284_v60, 16  ;;  %v1352_v4 = vshll.u32 %v1284_v60, 16 }
 0x156   : > { %v1358_v5 = vshll.u32 %v1285_v63, 16  ;;  %v1043_v9 = vld [vmem:[#allocation2 + $0x28] sm:$0xf]  ;;  %1174 = vst [vmem:[#allocation3 + $0x7c] sm:$0xf] %v1106_v2  ;;  %v1363_v10 = vshrl.u32 %v1286_v0, 16  ;;  %3311 = vmatpush3.bf16.msra.mxu1 %v3485_v51 }
 0x157   : > { %v1366_v11 = vshll.u32 %v1286_v0, 16  ;;  %v1372_v12 = vshll.u32 %v1287_v1, 16  ;;  %v1044_v13 = vld [vmem:[#allocation2 + $0x2c] sm:$0x1]  ;;  %v1108_v14 = vshrl.u32 %v1043_v9, 16  ;;  %v1351_v15 = vrot.slane %v1349_v3, 4  ;;  %3312 = vmatprep.subr.bf16.mxu1 %v3488_v7 }
 0x158   : > { %v1354_v16 = vrot.slane %v1352_v4, 5  ;;  %v1360_v18 = vrot.slane %v1358_v5, 5  ;;  %v1045_v19 = vld [vmem:[#allocation2 + $0x30] sm:$0xf]  ;;  %v1111_v21 = vshll.u32 %v1043_v9, 16  ;;  %v1365_v24 = vrot.slane %v1363_v10, 4 }
 0x159   : > { %v1513_v23 = vld [vmem:[#allocation3 + $0x60] sm:$0xff]  ;;  %v1368_v25 = vrot.slane %v1366_v11, 5  ;;  %v1374_v26 = vrot.slane %v1372_v12, 5  ;;  %v1110_v30 = vrot.slane %v1108_v14, 4  ;;  %v1117_v32 = vshll.u32 %v1044_v13, 16  ;;  %v3495_v8 = vld [vmem:[%s4199_s4 + $0x218] sm:$0xff]  }
 0x15a   : > { %v1046_v27 = vld [vmem:[#allocation2 + $0x34] sm:$0x1]  ;;  %v1355_v29 = vor.u32 %v1354_v16, %v1351_v15  ;;  %v1113_v31 = vrot.slane %v1111_v21, 5  ;;  %v1122_v36 = vshrl.u32 %v1045_v19, 16  ;;  %v1125_v37 = vshll.u32 %v1045_v19, 16  ;;  %3313 = vmatpush3.bf16.msra.mxu1 %v3488_v7 }
 0x15b   : > { %v1518_v28 = vld [vmem:[#allocation3 + $0x84] sm:$0xff]  ;;  %v1369_v34 = vor.u32 %v1368_v25, %v1365_v24  ;;  %v1187_v38 = vld [vmem:[#allocation2 + $0x28] sm:$0xe]  ;;  %v1188_v39 = vld [vmem:[#allocation2 + $0x2c] sm:$0x1]  ;;  %v1119_v42 = vrot.slane %v1117_v32, 5  ;;  %3314 = vmatprep.subr.bf16.mxu1 %v4025_v22 }
 0x15c   : > { %v3480_v6 = vld [vmem:[#allocation3 + $0x64] ss:$36 sps:$4 sm:$0xff]   ;;  %v2971_v33 = vcombine.low %v1513_v23, %v1518_v28  ;;  %v1356_v40 = vrot.slane %v1355_v29, 4  ;;  %v1114_v41 = vor.u32 %v1113_v31, %v1110_v30  ;;  %v1131_v44 = vshll.u32 %v1046_v27, 16  ;;  %v1189_v45 = vld [vmem:[#allocation2 + $0x30] sm:$0xe] }
 0x15d   : > { %2535 = vmatprep.mubr.bf16.mxu0 %v3480_v6  ;;  %v1370_v46 = vrot.slane %v1369_v34, 4  ;;  %v1124_v35 = vrot.slane %v1122_v36, 4  ;;  %v1127_v20 = vrot.slane %v1125_v37, 5  ;;  %v1190_v47 = vld [vmem:[#allocation2 + $0x34] sm:$0x1]  ;;  %v2944_v55 = vrot.slane %v1187_v38, 9 }
 0x15e   : > { %2536 = vmatmul.mubr.bf16.gmra.mxu0 %v2971_v33  ;;  %v3483_v48 = vld [vmem:[#allocation3 + $0x5c] ss:$36 sps:$4 sm:$0xff]   ;;  %v1361_v49 = vsel %vm3774_vm10, %v1356_v40, %v1360_v18  ;;  %v1115_v51 = vrot.slane %v1114_v41, 4  ;;  %v1133_v54 = vrot.slane %v1131_v44, 5  ;;  %v1266_v56 = vld [vmem:[#allocation2 + $0x40] sm:$0xf]  ;;  %3315 = vmatpush3.bf16.msra.mxu1 %v4025_v22 }
 0x15f   : > { %v3489_v50 = vld [vmem:[#allocation3 + $0x58] ss:$36 sps:$4 sm:$0xff]   ;;  %v1375_v52 = vsel %vm3774_vm10, %v1370_v46, %v1374_v26  ;;  %1416 = vst [vmem:[#allocation3 + $0xac] sm:$0xf] %v1361_v49  ;;  %v1128_v53 = vor.u32 %v1127_v20, %v1124_v35  ;;  %v1288_v57 = vld [vmem:[#allocation2 + $0x40] sm:$0xf]  ;;  %2470 = vmatprep.mubr.bf16.mxu1 %v3483_v48  ;;  %3316 = vmatprep.subr.bf16.mxu1 %v3495_v8 }
 0x160   : > { %1417 = vst [vmem:[#allocation3 + $0xd0] sm:$0xf] %v1375_v52  ;;  %v1120_v58 = vsel %vm3774_vm10, %v1115_v51, %v1119_v42  ;;  %v1229_v59 = vrot.slane %v1188_v39, 5  ;;  %v2945_v60 = vrot.slane %v1189_v45, 9  ;;  %v1233_v61 = vrot.slane %v1190_v47, 5  ;;  %2471 = vmatmul.mubr.bf16.gmra.mxu1 %v3489_v50  ;;  %v3499_v16 = vld [vmem:[%s4199_s4 + $0x210] sm:$0xff]  }
 0x161   : > { %1274 = vst [vmem:[#allocation3 + $0xf0] sm:$0xf] %v1266_v56  ;;  %v1289_v62 = vld [vmem:[#allocation2 + $0x44] sm:$0x1]  ;;  %v1129_v63 = vrot.slane %v1128_v53, 4  ;;  %v1377_v0 = vshrl.u32 %v1288_v57, 16 }
 0x162   : > { %1175 = vst [vmem:[#allocation3 + $0xa0] sm:$0xf] %v1120_v58  ;;  %v1380_v1 = vshll.u32 %v1288_v57, 16  ;;  %v1386_v2 = vshll.u32 %v1289_v62, 16  ;;  %v1047_v3 = vld [vmem:[#allocation2 + $0x38] sm:$0xf]  ;;  %v1230_v4 = vsel %vm3738_vm7, %v2944_v55, %v1229_v59  ;;  %v1234_v5 = vsel %vm3738_vm7, %v2945_v60, %v1233_v61  ;;  %3317 = vmatpush3.bf16.msra.mxu1 %v3495_v8 }
 0x163   : > { %v1048_v7 = vld [vmem:[#allocation2 + $0x3c] sm:$0x1]  ;;  %v1049_v9 = vld [vmem:[#allocation2 + $0x40] sm:$0xf]  ;;  %v1050_v10 = vld [vmem:[#allocation2 + $0x44] sm:$0x1]  ;;  %v1134_v11 = vsel %vm3774_vm10, %v1129_v63, %v1133_v54  ;;  %3318 = vmatprep.subr.bf16.mxu1 %v3499_v16 }
 0x164   : > { %1255 = vst [vmem:[#allocation3 + $0xa4] sm:$0xf] %v1230_v4  ;;  %1256 = vst [vmem:[#allocation3 + $0xc8] sm:$0xf] %v1234_v5  ;;  %v1379_v12 = vrot.slane %v1377_v0, 4  ;;  %v1382_v13 = vrot.slane %v1380_v1, 5 }
 0x165   : > { %v1388_v14 = vrot.slane %v1386_v2, 5  ;;  %v1191_v15 = vld [vmem:[#allocation2 + $0x38] sm:$0xe]  ;;  %1176 = vst [vmem:[#allocation3 + $0xc4] sm:$0xf] %v1134_v11  ;;  %v1136_v18 = vshrl.u32 %v1047_v3, 16 }
 0x166   : > { %v1139_v19 = vshll.u32 %v1047_v3, 16  ;;  %v1145_v21 = vshll.u32 %v1048_v7, 16  ;;  %v1150_v22 = vshrl.u32 %v1049_v9, 16  ;;  %v1192_v23 = vld [vmem:[#allocation2 + $0x3c] sm:$0x1]  ;;  %v1383_v24 = vor.u32 %v1382_v13, %v1379_v12  ;;  %v3500_v33 = vld [vmem:[%s4199_s4 + $0x208] sm:$0xff]   ;;  %3319 = vmatpush3.bf16.msra.mxu1 %v3499_v16 }
 0x167   : > { %v1153_v25 = vshll.u32 %v1049_v9, 16  ;;  %v1159_v26 = vshll.u32 %v1050_v10, 16  ;;  %v1193_v27 = vld [vmem:[#allocation2 + $0x40] sm:$0xe]  ;;  %v1194_v28 = vld [vmem:[#allocation2 + $0x44] sm:$0x1]  ;;  %3320 = vmatprep.subr.bf16.mxu1 %v3500_v33 }
 0x168   : > { %v1523_v6 = vld [vmem:[#allocation3 + $0xa8] sm:$0xff]  ;;  %v1138_v29 = vrot.slane %v1136_v18, 4  ;;  %v1141_v30 = vrot.slane %v1139_v19, 5  ;;  %v1147_v31 = vrot.slane %v1145_v21, 5  ;;  %v1152_v32 = vrot.slane %v1150_v22, 4  ;;  %v3503_v57 = vld [vmem:[%s4199_s4 + $0x200] sm:$0xff]  }
 0x169   : > { %v1528_v34 = vld [vmem:[#allocation3 + $0xcc] sm:$0xff]  ;;  %v1384_v37 = vrot.slane %v1383_v24, 4  ;;  %v1155_v38 = vrot.slane %v1153_v25, 5  ;;  %v1161_v39 = vrot.slane %v1159_v26, 5  ;;  %v2946_v42 = vrot.slane %v1191_v15, 9  ;;  %v1538_v10 = vld [vmem:[#allocation3 + $0x114] sm:$0xff] }
 0x16a   : > { %v3486_v36 = vld [vmem:[#allocation3 + $0xac] ss:$36 sps:$4 sm:$0xff]   ;;  %v2980_v40 = vcombine.low %v1523_v6, %v1528_v34  ;;  %v1142_v41 = vor.u32 %v1141_v30, %v1138_v29  ;;  %v1237_v44 = vrot.slane %v1192_v23, 5  ;;  %v1420_v45 = vld [vmem:[#allocation2 + $0x10] sm:$0xe]  ;;  %v2947_v47 = vrot.slane %v1193_v27, 9  ;;  %3321 = vmatpush3.bf16.msra.mxu1 %v3500_v33 }
 0x16b   : > { %v1421_v46 = vld [vmem:[#allocation2 + $0x14] sm:$0x1]  ;;  %2543 = vmatprep.mubr.bf16.mxu0 %v3486_v36  ;;  %v1389_v35 = vsel %vm3774_vm10, %v1384_v37, %v1388_v14  ;;  %v1156_v20 = vor.u32 %v1155_v38, %v1152_v32  ;;  %v1241_v8 = vrot.slane %v1194_v28, 5  ;;  %v1422_v48 = vld [vmem:[#allocation2 + $0x18] sm:$0xe]  ;;  %v2948_v52 = vrot.slane %v1420_v45, 9  ;;  %3322 = vmatprep.subr.bf16.mxu1 %v3503_v57 }
 0x16c   : > { %v1423_v49 = vld [vmem:[#allocation2 + $0x1c] sm:$0x1]  ;;  %2544 = vmatmul.mubr.bf16.gmra.mxu0 %v2980_v40  ;;  %1418 = vst [vmem:[#allocation3 + $0xf4] sm:$0xf] %v1389_v35  ;;  %v1143_v50 = vrot.slane %v1142_v41, 4  ;;  %v1238_v51 = vsel %vm3738_vm7, %v2946_v42, %v1237_v44  ;;  %v1454_v53 = vrot.slane %v1421_v46, 5 }
 0x16d   : > { %v3490_v54 = vld [vmem:[#allocation3 + $0xa4] ss:$36 sps:$4 sm:$0xff]   ;;  %v1157_v55 = vrot.slane %v1156_v20, 4  ;;  %v1242_v56 = vsel %vm3738_vm7, %v2947_v47, %v1241_v8  ;;  %1257 = vst [vmem:[#allocation3 + $0xec] sm:$0xf] %v1238_v51  ;;  %v2949_v61 = vrot.slane %v1422_v48, 9 }
 0x16e   : > { %v3496_v58 = vld [vmem:[#allocation3 + $0xa0] ss:$36 sps:$4 sm:$0xff]   ;;  %v1148_v59 = vsel %vm3774_vm10, %v1143_v50, %v1147_v31  ;;  %1258 = vst [vmem:[#allocation3 + $0x110] sm:$0xf] %v1242_v56  ;;  %v1455_v60 = vsel %vm3738_vm7, %v2948_v52, %v1454_v53  ;;  %v1458_v62 = vrot.slane %v1423_v49, 5  ;;  %2478 = vmatprep.mubr.bf16.mxu1 %v3490_v54  ;;  %3323 = vmatpush3.bf16.msra.mxu1 %v3503_v57  ;;  %v3509_v29 = vld [vmem:[%s4202_s7 + $0x28] sm:$0xff]  }
 0x16f   : > { %v1162_v63 = vsel %vm3774_vm10, %v1157_v55, %v1161_v39  ;;  %1177 = vst [vmem:[#allocation3 + $0xe8] sm:$0xf] %v1148_v59  ;;  %1492 = vst [vmem:[#allocation3 + $0x20] sm:$0xf] %v1455_v60  ;;  %v1428_v0 = vld [vmem:[#allocation2 + $0x30] sm:$0xe]  ;;  %2479 = vmatmul.mubr.bf16.gmra.mxu1 %v3496_v58  ;;  %3356 = vmatprep.subr.bf16.mxu1 %v3507_v17 }
 0x170   : > { %v1429_v1 = vld [vmem:[#allocation2 + $0x34] sm:$0x1]  ;;  %v1430_v2 = vld [vmem:[#allocation2 + $0x38] sm:$0xe]  ;;  %1178 = vst [vmem:[#allocation3 + $0x10c] sm:$0xf] %v1162_v63  ;;  %v1459_v3 = vsel %vm3738_vm7, %v2949_v61, %v1458_v62 }
 0x171   : > { %v1431_v4 = vld [vmem:[#allocation2 + $0x3c] sm:$0x1]  ;;  %v2952_v5 = vrot.slane %v1428_v0, 9  ;;  %v1470_v7 = vrot.slane %v1429_v1, 5  ;;  %v2953_v9 = vrot.slane %v1430_v2, 9  ;;  %v3508_v6 = vld [vmem:[%s4202_s7 + $0x30] sm:$0xff]  }
 0x172   : > { %1493 = vst [vmem:[#allocation3 + $0x44] sm:$0xf] %v1459_v3  ;;  %v1474_v11 = vrot.slane %v1431_v4, 5  ;;  %v1432_v43 = vld [vmem:[#allocation2 + $0x40] sm:$0xe]  ;;  %3334 = vmatprep.subr.bf16.mxu0 %v3508_v6  ;;  %v3511_v31 = vld [vmem:[%s4202_s7 + $0x18] sm:$0xff]  }
 0x173   : > { %v1433_v12 = vld [vmem:[#allocation2 + $0x44] sm:$0x1]  ;;  %v1471_v13 = vsel %vm3738_vm7, %v2952_v5, %v1470_v7  ;;  %v2954_v14 = vrot.slane %v1432_v43, 9  ;;  %v3504_v26 = vld [vmem:[#allocation3 + $0x68] ss:$36 sps:$4 sm:$0xff]   ;;  %3335 = vmatpush3.bf16.msra.mxu0 %v3508_v6  ;;  %v3512_v32 = vld [vmem:[%s4202_s7 + $0x10] sm:$0xff]  }
 0x174   : > { %v1478_v15 = vrot.slane %v1433_v12, 5  ;;  %v1533_v16 = vld [vmem:[#allocation3 + $0xf0] sm:$0xff]  ;;  %v1475_v19 = vsel %vm3738_vm7, %v2953_v9, %v1474_v11  ;;  %1496 = vst [vmem:[#allocation3 + $0xb0] sm:$0xf] %v1471_v13  ;;  %3336 = vmatprep.subr.bf16.mxu0 %v3509_v29  ;;  %v3513_v33 = vld [vmem:[%s4202_s7 + $0x8] sm:$0xff]  }
 0x175   : > { %v3493_v18 = vld [vmem:[#allocation3 + $0xf4] ss:$36 sps:$4 sm:$0xff]   ;;  %v2989_v21 = vcombine.low %v1533_v16, %v1538_v10  ;;  %1497 = vst [vmem:[#allocation3 + $0xd4] sm:$0xf] %v1475_v19  ;;  %v3497_v23 = vld [vmem:[#allocation3 + $0xec] ss:$36 sps:$4 sm:$0xff]  }
 0x176   : > { %v1479_v22 = vsel %vm3738_vm7, %v2954_v14, %v1478_v15  ;;  %2551 = vmatprep.mubr.bf16.mxu0 %v3493_v18  ;;  %2486 = vmatprep.mubr.bf16.mxu1 %v3497_v23  ;;  %v3510_v30 = vld [vmem:[%s4202_s7 + $0x20] sm:$0xff]  }
 0x177   : > { %1498 = vst [vmem:[#allocation3 + $0xf8] sm:$0xf] %v1479_v22  ;;  %2552 = vmatmul.mubr.bf16.gmra.mxu0 %v2989_v21  ;;  %v3501_v24 = vld [vmem:[#allocation3 + $0xe8] ss:$36 sps:$4 sm:$0xff]   ;;  %v3514_v34 = vld [vmem:[%s4202_s7] sm:$0xff]  }
 0x178   : > { %2487 = vmatmul.mubr.bf16.gmra.mxu1 %v3501_v24  ;;  %3337 = vmatpush3.bf16.msra.mxu0 %v3509_v29 }
 0x179   : > { %v3502_v25 = vld [vmem:[#allocation3 + $0x20] ss:$36 sps:$4 sm:$0xff]   ;;  %3338 = vmatprep.subr.bf16.mxu0 %v3510_v30 }
 0x17a   : > { %3324 = vmatprep.mubr.bf16.mxu1 %v3502_v25 }
 0x17c   : > { %v3505_v27 = vld [vmem:[#allocation3 + $0xb0] ss:$36 sps:$4 sm:$0xff]   ;;  %3339 = vmatpush3.bf16.msra.mxu0 %v3510_v30 }
 0x17d   : > { %3340 = vmatprep.subr.bf16.mxu0 %v3511_v31 }
 0x17e   : > { %v3506_v28 = vld [vmem:[#allocation3 + $0xf8] ss:$36 sps:$4 sm:$0xff]  }
 0x180   : > { %3325 = vmatmul.mubr.bf16.vlgmr.msra.gmra.mxu1 %v3504_v26  ;;  %3341 = vmatpush3.bf16.msra.mxu0 %v3511_v31 }
 0x181   : > { %3328 = vmatprep.mubr.bf16.mxu1 %v3505_v27  ;;  %3364 = vmatpush3.bf16.msra.mxu1 %v3507_v17 }
 0x182   : > { %3357 = vmatprep.subr.bf16.mxu1 %v3508_v6  ;;  %3342 = vmatprep.subr.bf16.mxu0 %v3512_v32 }
 0x184   : > { %3343 = vmatpush3.bf16.msra.mxu0 %v3512_v32 }
 0x185   : > { %3365 = vmatpush3.bf16.msra.mxu1 %v3508_v6  ;;  %3344 = vmatprep.subr.bf16.mxu0 %v3513_v33 }
 0x186   : > { %3358 = vmatprep.subr.bf16.mxu1 %v3509_v29 }
 0x188   : > { %3329 = vmatmul.mubr.bf16.gmra.mxu1 %v3506_v28  ;;  %3345 = vmatpush3.bf16.msra.mxu0 %v3513_v33 }
 0x189   : > { %3366 = vmatpush3.bf16.msra.mxu1 %v3509_v29  ;;  %3346 = vmatprep.subr.bf16.mxu0 %v3514_v34 }
 0x18a   : > { %3359 = vmatprep.subr.bf16.mxu1 %v3510_v30 }
 0x18c   : > { %3347 = vmatpush3.bf16.msra.mxu0 %v3514_v34 }
 0x18d   : > { %3367 = vmatpush3.bf16.msra.mxu1 %v3510_v30 }
 0x18e   : > { %3360 = vmatprep.subr.bf16.mxu1 %v3511_v31 }
 0x191   : > { %3368 = vmatpush3.bf16.msra.mxu1 %v3511_v31 }
 0x192   : > { %3361 = vmatprep.subr.bf16.mxu1 %v3512_v32 }
 0x195   : > { %3369 = vmatpush3.bf16.msra.mxu1 %v3512_v32 }
 0x196   : > { %3362 = vmatprep.subr.bf16.mxu1 %v3513_v33 }
 0x199   : > { %3370 = vmatpush3.bf16.msra.mxu1 %v3513_v33 }
 0x19a   : > { %3363 = vmatprep.subr.bf16.mxu1 %v3514_v34 }
 0x19d   : > { %3371 = vmatpush3.bf16.msra.mxu1 %v3514_v34 }
 0x1db   : > { %v3156_v36 = vpop.f32.mrf.mxu0 }
 0x1dd   : > { %v3157_v37 = vpop.f32.mrf.mxu0 }
 0x1de   : > { %v3158_v32 = vadd.f32 %v3157_v37, %v3156_v36 }
 0x1df   : > { %v4097_v38 = vpop.f32.mrf.mxu0 }
 0x1e1   : > { %v4099_v39 = vpop.f32.mrf.mxu0 }
 0x1e5   : > { %v3162_v40 = vpop.f32.mrf.mxu0 }
 0x1e7   : > { %v3163_v41 = vpop.f32.mrf.mxu0 }
 0x1e8   : > { %v3164_v29 = vadd.f32 %v3163_v41, %v3162_v40 }
 0x1e9   : > { %v3165_v44 = vpop.f32.mrf.mxu0 }
 0x1ea   : > { %v3116_v42 = vpop.f32.mrf.mxu1 }
 0x1eb   : > { %v3166_v46 = vpop.f32.mrf.mxu0 }
 0x1ec   : > { %v3117_v45 = vpop.f32.mrf.mxu1 }
 0x1ed   : > { %v3118_v17 = vadd.f32 %v3117_v45, %v3116_v42  ;;  %v3161_v42 = vadd.f32 %v4099_v39, %v4097_v38 }
 0x1ee   : > { %v3119_v35 = vpop.f32.mrf.mxu1  ;;  %v4101_v20 = vpop.f32.mrf.mxu0 }
 0x1f0   : > { %v3120_v47 = vpop.f32.mrf.mxu1  ;;  %v4103_v8 = vpop.f32.mrf.mxu0 }
 0x1f2   : > { %v4105_v49 = vpop.f32.mrf.mxu0 }
 0x1f4   : > { %v3122_v48 = vpop.f32.mrf.mxu1  ;;  %v4107_v51 = vpop.f32.mrf.mxu0 }
 0x1f6   : > { %v3123_v50 = vpop.f32.mrf.mxu1 }
 0x1f7   : > { %v3124_v28 = vadd.f32 %v3123_v50, %v3122_v48 }
 0x1f8   : > { %v3125_v52 = vpop.f32.mrf.mxu1 }
 0x1fa   : > { %v3126_v53 = vpop.f32.mrf.mxu1 }
 0x1fb   : > { %v4109_v54 = vpop.f32.mrf.mxu0  ;;  %v3127_v33 = vadd.f32 %v3126_v53, %v3125_v52  ;;  %v3170_v53 = vadd.f32 %v4103_v8, %v4101_v20 }
 0x1fc   : > { %v3128_v55 = vpop.f32.mrf.mxu1 }
 0x1fd   : > { %v4111_v57 = vpop.f32.mrf.mxu0 }
 0x1fe   : > { %v3129_v56 = vpop.f32.mrf.mxu1 }
 0x1ff   : > { %v4117_v60 = vpop.f32.mrf.mxu0  ;;  %v3130_v41 = vadd.f32 %v3129_v56, %v3128_v55  ;;  %v3173_v55 = vadd.f32 %v4107_v51, %v4105_v49  ;;  %v3064_v49 = vld [vmem:[%s4200_s5] ss:$0 sm:$0xff] }
 0x200   : > { %v4113_v58 = vpop.f32.mrf.mxu1  ;;  %4218 = vst [vmem:[#allocation6_spill] sm:$0xff] %v4117_v60  ;;  %v2400_v60 = vadd.f32 %v3158_v32, %v3118_v17 }
 0x201   : > { %4216 = vst [vmem:[#allocation4_spill] sm:$0xff] %v4113_v58  ;;  %v4119_v63 = vpop.f32.mrf.mxu0 }
 0x202   : > { %v4115_v59 = vpop.f32.mrf.mxu1  ;;  %4219 = vst [vmem:[#allocation7_spill] sm:$0xff] %v4119_v63  ;;  %v2408_v63 = vadd.f32 %v3164_v29, %v3124_v28 }
 0x203   : > { %4217 = vst [vmem:[#allocation5_spill] sm:$0xff] %v4115_v59 }
 0x206   : > { %v3134_v61 = vpop.f32.mrf.mxu1 }
 0x208   : > { %v3135_v62 = vpop.f32.mrf.mxu1 }
 0x209   : > { %v3136_v50 = vadd.f32 %v3135_v62, %v3134_v61  ;;  %v2416_v62 = vadd.f32 %v3170_v53, %v3130_v41 }
 0x20a   : > { %v4121_v0 = vpop.f32.mrf.mxu1 }
 0x20c   : > { %v4123_v1 = vpop.f32.mrf.mxu1 }
 0x20d   : > { %v3139_v20 = vadd.f32 %v4123_v1, %v4121_v0 }
 0x20f   : > { %v3236_v2 = vpop.f32.mrf.mxu0 }
 0x211   : > { %v3237_v3 = vpop.f32.mrf.mxu0  ;;  %v3196_v4 = vpop.f32.mrf.mxu1 }
 0x213   : > { %v4125_v5 = vpop.f32.mrf.mxu0  ;;  %v3197_v7 = vpop.f32.mrf.mxu1 }
 0x214   : > { %4220 = vst [vmem:[#allocation8_spill] sm:$0xff] %v4125_v5  ;;  %v3198_v34 = vadd.f32 %v3197_v7, %v3196_v4 }
 0x215   : > { %v4127_v9 = vpop.f32.mrf.mxu0  ;;  %v3199_v10 = vpop.f32.mrf.mxu1 }
 0x216   : > { %4221 = vst [vmem:[#allocation9_spill] sm:$0xff] %v4127_v9  ;;  %v3121_v9 = vadd.f32 %v3120_v47, %v3119_v35  ;;  %v2465_v48 = vadd.f32 %v3198_v34, %v2400_v60  ;;  %v3238_v35 = vadd.f32 %v3237_v3, %v3236_v2  ;;  %v3176_v47 = vadd.f32 %v4111_v57, %v4109_v54  ;;  %v4225_v3 = vld [vmem:[#allocation4_spill] sm:$0xff] }
 0x217   : > { %v3200_v43 = vpop.f32.mrf.mxu1 }
 0x218   : > { %v3201_v40 = vadd.f32 %v3200_v43, %v3199_v10  ;;  %v2403_v52 = vadd.f32 %v3161_v42, %v3121_v9  ;;  %v2530_v61 = vadd.f32 %v3238_v35, %v2465_v48  ;;  %v2424_v7 = vadd.f32 %v3176_v47, %v3136_v50  ;;  %v4229_v43 = vld [vmem:[#allocation6_spill] sm:$0xff] }
 0x21a   : > { %v2468_v56 = vadd.f32 %v3201_v40, %v2403_v52 }
 0x21b   : > { %v4227_v57 = vld [vmem:[#allocation8_spill] sm:$0xff] }
 0x21d   : > { %v4228_v9 = vld [vmem:[#allocation9_spill] sm:$0xff] }
 0x21e   : > { %v3242_v11 = vpop.f32.mrf.mxu0 }
 0x220   : > { %v3243_v12 = vpop.f32.mrf.mxu0  ;;  %v3202_v13 = vpop.f32.mrf.mxu1 }
 0x221   : > { %v3244_v36 = vadd.f32 %v3243_v12, %v3242_v11  ;;  %v4230_v12 = vld [vmem:[#allocation7_spill] sm:$0xff] }
 0x222   : > { %v3245_v14 = vpop.f32.mrf.mxu0  ;;  %v3203_v15 = vpop.f32.mrf.mxu1 }
 0x223   : > { %v3204_v30 = vadd.f32 %v3203_v15, %v3202_v13  ;;  %v3179_v13 = vadd.f32 %v4230_v12, %v4229_v43 }
 0x224   : > { %v3205_v16 = vpop.f32.mrf.mxu1  ;;  %v3246_v18 = vpop.f32.mrf.mxu0 }
 0x225   : > { %v2473_v58 = vadd.f32 %v3204_v30, %v2408_v63  ;;  %v3247_v60 = vadd.f32 %v3246_v18, %v3245_v14 }
 0x226   : > { %v3206_v19 = vpop.f32.mrf.mxu1 }
 0x227   : > { %v3207_v5 = vadd.f32 %v3206_v19, %v3205_v16  ;;  %v2538_v38 = vadd.f32 %v3244_v36, %v2473_v58  ;;  %v3241_v58 = vadd.f32 %v4228_v9, %v4227_v57 }
 0x22c   : > { %v4129_v21 = vpop.f32.mrf.mxu0 }
 0x22d   : > { %4222 = vst [vmem:[#allocation10_spill] sm:$0xff] %v4129_v21 }
 0x22e   : > { %v4131_v23 = vpop.f32.mrf.mxu0 }
 0x22f   : > { %v3208_v22 = vpop.f32.mrf.mxu1  ;;  %4223 = vst [vmem:[#allocation11_spill] sm:$0xff] %v4131_v23  ;;  %v3167_v23 = vadd.f32 %v3166_v46, %v3165_v44 }
 0x230   : > { %v4133_v26 = vpop.f32.mrf.mxu0 }
 0x231   : > { %v3209_v24 = vpop.f32.mrf.mxu1  ;;  %4224 = vst [vmem:[#allocation12_spill] sm:$0xff] %v4133_v26  ;;  %v2411_v45 = vadd.f32 %v3167_v23, %v3127_v33  ;;  %v3065_v33 = vld [vmem:[%s4201_s6] ss:$0 sm:$0xff] }
 0x232   : > { %v4135_v6 = vpop.f32.mrf.mxu0  ;;  %v3210_v63 = vadd.f32 %v3209_v24, %v3208_v22  ;;  %v2427_v22 = vadd.f32 %v3179_v13, %v3139_v20 }
 0x233   : > { %v3211_v25 = vpop.f32.mrf.mxu1  ;;  %v2476_v44 = vadd.f32 %v3207_v5, %v2411_v45  ;;  %v4226_v5 = vld [vmem:[#allocation5_spill] sm:$0xff] }
 0x234   : > { %v3133_v54 = vadd.f32 %v4226_v5, %v4225_v3  ;;  %v2481_v14 = vadd.f32 %v3210_v63, %v2416_v62  ;;  %v4231_v23 = vld [vmem:[#allocation10_spill] sm:$0xff] }
 0x235   : > { %v3212_v27 = vpop.f32.mrf.mxu1  ;;  %v2541_v11 = vadd.f32 %v3247_v60, %v2476_v44 }
 0x236   : > { %v3213_v16 = vadd.f32 %v3212_v27, %v3211_v25  ;;  %v4232_v24 = vld [vmem:[#allocation11_spill] sm:$0xff] }
 0x237   : > { %v3254_v59 = vpop.f32.mrf.mxu0  ;;  %v3250_v28 = vadd.f32 %v4232_v24, %v4231_v23 }
 0x238   : > { %v3214_v31 = vpop.f32.mrf.mxu1  ;;  %v4233_v53 = vld [vmem:[#allocation12_spill] sm:$0xff] }
 0x239   : > { %v3255_v46 = vpop.f32.mrf.mxu0  ;;  %v2546_v45 = vadd.f32 %v3250_v28, %v2481_v14  ;;  %v3253_v35 = vadd.f32 %v4135_v6, %v4233_v53  ;;  %v3075_v14 = vld [vmem:[%s4204_s9] ss:$0 sm:$0xff] }
 0x23a   : > { %v3215_v21 = vpop.f32.mrf.mxu1  ;;  %v3256_v17 = vadd.f32 %v3255_v46, %v3254_v59 }
 0x23b   : > { %v3216_v4 = vadd.f32 %v3215_v21, %v3214_v31  ;;  %v3257_v10 = vpop.f32.mrf.mxu0  ;;  %v2533_v21 = vadd.f32 %v3241_v58, %v2468_v56  ;;  %v2419_v31 = vadd.f32 %v3173_v55, %v3133_v54 }
 0x23c   : > { %v3217_v26 = vpop.f32.mrf.mxu1 }
 0x23d   : > { %v2489_v0 = vadd.f32 %v3216_v4, %v2424_v7  ;;  %v3258_v32 = vpop.f32.mrf.mxu0  ;;  %v2484_v48 = vadd.f32 %v3213_v16, %v2419_v31 }
 0x23e   : > { %v3218_v37 = vpop.f32.mrf.mxu1  ;;  %v3259_v36 = vadd.f32 %v3258_v32, %v3257_v10 }
 0x23f   : > { %v3219_v1 = vadd.f32 %v3218_v37, %v3217_v26  ;;  %v2554_v25 = vadd.f32 %v3256_v17, %v2489_v0  ;;  %v2549_v56 = vadd.f32 %v3253_v35, %v2484_v48  ;;  %v3516_v17 = vld [vmem:[%s3612_s24] sm:$0xff]  ;;  %v3518_v48 = vld [vmem:[%s3612_s24 + $0x8] sm:$0xff] }
 0x240   : > { %v3326_v39 = vpop.f32.mrf.mxu1 }
 0x241   : > { %v2603_v8 = vadd.f32 %v3326_v39, %v2538_v38  ;;  %v2492_v42 = vadd.f32 %v3219_v1, %v2427_v22 }
 0x242   : > { %v2594_v2 = vpop.f32.mrf.mxu1 }
 0x243   : > { %v2595_v51 = vadd.f32 %v2594_v2, %v2530_v61  ;;  %v2634_v29 = vmul.f32 %v3064_v49, %v2603_v8  ;;  %v2557_v63 = vadd.f32 %v3259_v36, %v2492_v42 }
 0x244   : > { %v3327_v15 = vpop.f32.mrf.mxu1 }
 0x245   : > { %v2632_v18 = vmul.f32 %v3064_v49, %v2595_v51  ;;  %v2606_v19 = vadd.f32 %v3327_v15, %v2541_v11  ;;  %v2649_v59 = vadd.f32 %v3065_v33, %v2634_v29 }
 0x246   : > { %v2597_v30 = vpop.f32.mrf.mxu1 }
 0x247   : > { %v2635_v34 = vmul.f32 %v3064_v49, %v2606_v19  ;;  %v2598_v26 = vadd.f32 %v2597_v30, %v2533_v21  ;;  %v2647_v40 = vadd.f32 %v3065_v33, %v2632_v18  ;;  %v2657_v60 = vmax.f32 %v2649_v59, 0.0  ;;  %v3515_v19 = vld [vmem:[%s3612_s24 + $0x10] sm:$0xff] }
 0x248   : > { %v3330_v27 = vpop.f32.mrf.mxu1 }
 0x249   : > { %v2650_v41 = vadd.f32 %v3065_v33, %v2635_v34  ;;  %v2633_v50 = vmul.f32 %v3064_v49, %v2598_v26  ;;  %v2619_v37 = vadd.f32 %v3330_v27, %v2554_v25  ;;  %v2655_v38 = vmax.f32 %v2647_v40, 0.0  ;;  %v3517_v34 = vld [vmem:[%s3612_s24 + $0x18] sm:$0xff] }
 0x24a   : > { %v2610_v52 = vpop.f32.mrf.mxu1 }
 0x24b   : > { %v2648_v44 = vadd.f32 %v3065_v33, %v2633_v50  ;;  %v2611_v46 = vadd.f32 %v2610_v52, %v2546_v45  ;;  %v2658_v47 = vmax.f32 %v2650_v41, 0.0  ;;  %v2638_v61 = vmul.f32 %v3064_v49, %v2619_v37  ;;  %v3519_v37 = vld [vmem:[%s3612_s24 + $0x30] sm:$0xff] }
 0x24c   : > { %v3331_v4 = vpop.f32.mrf.mxu1 }
 0x24d   : > { %v2656_v39 = vmax.f32 %v2648_v44, 0.0  ;;  %v2636_v55 = vmul.f32 %v3064_v49, %v2611_v46  ;;  %v2622_v62 = vadd.f32 %v3331_v4, %v2557_v63  ;;  %v2664_v2 = vpack.c.bf16 %v2658_v47, %v2657_v60  ;;  %v3520_v47 = vld [vmem:[%s3612_s24 + $0x20] sm:$0xff] }
 0x24e   : > { %v2613_v7 = vpop.f32.mrf.mxu1  ;;  %v2653_v6 = vadd.f32 %v3065_v33, %v2638_v61 }
 0x24f   : > { %v2614_v20 = vadd.f32 %v2613_v7, %v2549_v56  ;;  %v2663_v8 = vpack.c.bf16 %v2656_v39, %v2655_v38  ;;  %v2639_v3 = vmul.f32 %v3064_v49, %v2622_v62  ;;  %v2651_v5 = vadd.f32 %v3065_v33, %v2636_v55  ;;  %v3521_v55 = vld [vmem:[%s3612_s24 + $0x38] sm:$0xff]  ;;  %v3522_v62 = vld [vmem:[%s3612_s24 + $0x28] sm:$0xff] }
 0x250   : > { %v2661_v11 = vmax.f32 %v2653_v6, 0.0 }
 0x251   : > { %v2637_v54 = vmul.f32 %v3064_v49, %v2614_v20  ;;  %3348 = vmatprep.mubr.bf16.mxu0 %v2663_v8  ;;  %v2654_v57 = vadd.f32 %v3065_v33, %v2639_v3  ;;  %v2659_v10 = vmax.f32 %v2651_v5, 0.0  ;;  %v3074_v49 = vld [vmem:[%s4203_s8] ss:$0 sm:$0xff] }
 0x252   : > { %3349 = vmatmul.mubr.bf16.vlgmr.msra.gmra.mxu0 %v2664_v2 }
 0x253   : > { %v2652_v9 = vadd.f32 %v3065_v33, %v2637_v54  ;;  %v2662_v58 = vmax.f32 %v2654_v57, 0.0 }
 0x255   : > { %v2660_v51 = vmax.f32 %v2652_v9, 0.0  ;;  %v2666_v12 = vpack.c.bf16 %v2662_v58, %v2661_v11 }
 0x257   : > { %v2665_v43 = vpack.c.bf16 %v2660_v51, %v2659_v10 }
 0x259   : > { %3352 = vmatprep.mubr.bf16.mxu1 %v2665_v43 }
 0x25a   : > { %3353 = vmatmul.mubr.bf16.vlgmr.msra.gmra.mxu1 %v2666_v12 }
 0x312   : > { %v3350_v13 = vpop.f32.mrf.mxu0 }
 0x313   : > { %v2805_v0 = vmul.f32 %v3350_v13, %v3074_v49 }
 0x314   : > { %v2765_v1 = vpop.f32.mrf.mxu0 }
 0x315   : > { %v2820_v15 = vadd.f32 %v3075_v14, %v2805_v0  ;;  %v2803_v16 = vmul.f32 %v3074_v49, %v2765_v1 }
 0x316   : > { %v3351_v18 = vpop.f32.mrf.mxu0 }
 0x317   : > { %v2828_v21 = vadd.f32 %v3515_v19, %v2820_v15  ;;  %v2818_v22 = vadd.f32 %v3075_v14, %v2803_v16  ;;  %v2806_v23 = vmul.f32 %v3351_v18, %v3074_v49 }
 0x318   : > { %v2768_v24 = vpop.f32.mrf.mxu0 }
 0x319   : > { %v2836_v28 = vmax.f32 %v2828_v21, 0.0  ;;  %v2826_v29 = vadd.f32 %v3516_v17, %v2818_v22  ;;  %v2821_v30 = vadd.f32 %v3075_v14, %v2806_v23  ;;  %v2804_v31 = vmul.f32 %v3074_v49, %v2768_v24 }
 0x31a   : > { %v3354_v32 = vpop.f32.mrf.mxu1 }
 0x31b   : > { %2844 = vst [vmem:[%s4175_s15 + $0x10] sm:$0xff] %v2836_v28  ;;  %v2834_v33 = vmax.f32 %v2826_v29, 0.0  ;;  %v2829_v26 = vadd.f32 %v3517_v34, %v2821_v30  ;;  %v2819_v42 = vadd.f32 %v3075_v14, %v2804_v31  ;;  %v2809_v25 = vmul.f32 %v3354_v32, %v3074_v49 }
 0x31c   : > { %v2781_v27 = vpop.f32.mrf.mxu1 }
 0x31d   : > { %2842 = vst [vmem:[%s4175_s15] sm:$0xff] %v2834_v33  ;;  %v2837_v45 = vmax.f32 %v2829_v26, 0.0  ;;  %v2827_v40 = vadd.f32 %v3518_v48, %v2819_v42  ;;  %v2824_v41 = vadd.f32 %v3075_v14, %v2809_v25  ;;  %v2807_v50 = vmul.f32 %v3074_v49, %v2781_v27 }
 0x31e   : > { %v3355_v36 = vpop.f32.mrf.mxu1 }
 0x31f   : > { %2845 = vst [vmem:[%s4175_s15 + $0x18] sm:$0xff] %v2837_v45  ;;  %v2835_v59 = vmax.f32 %v2827_v40, 0.0  ;;  %v2832_v52 = vadd.f32 %v3519_v37, %v2824_v41  ;;  %v2822_v53 = vadd.f32 %v3075_v14, %v2807_v50  ;;  %v2810_v35 = vmul.f32 %v3355_v36, %v3074_v49 }
 0x320   : > { %v2784_v44 = vpop.f32.mrf.mxu1 }
 0x321   : > { %2843 = vst [vmem:[%s4175_s15 + $0x8] sm:$0xff] %v2835_v59  ;;  %v2840_v46 = vmax.f32 %v2832_v52, 0.0  ;;  %v2830_v63 = vadd.f32 %v3520_v47, %v2822_v53  ;;  %v2825_v4 = vadd.f32 %v3075_v14, %v2810_v35  ;;  %v2808_v38 = vmul.f32 %v3074_v49, %v2784_v44 }
 0x323   : > { %2848 = vst [vmem:[%s4175_s15 + $0x30] sm:$0xff] %v2840_v46  ;;  %v2838_v39 = vmax.f32 %v2830_v63, 0.0  ;;  %v2833_v56 = vadd.f32 %v3521_v55, %v2825_v4  ;;  %v2823_v60 = vadd.f32 %v3075_v14, %v2808_v38 }
 0x325   : > { %2846 = vst [vmem:[%s4175_s15 + $0x20] sm:$0xff] %v2838_v39  ;;  %v2841_v61 = vmax.f32 %v2833_v56, 0.0  ;;  %v2831_v7 = vadd.f32 %v3522_v62, %v2823_v60 }
 0x327   : > { %2849 = vst [vmem:[%s4175_s15 + $0x38] sm:$0xff] %v2841_v61  ;;  %v2839_v20 = vmax.f32 %v2831_v7, 0.0 }
 0x329   : > { %2847 = vst [vmem:[%s4175_s15 + $0x28] sm:$0xff] %v2839_v20 }
 0x32a PF: > { %s20_s13 = sadd.s32 1, %s3529_s13  }
 0x32b   : > { %p17_p4 = scmp.ge.s32.totalorder %s20_s13, 4  }
 0x32d   :  { %19 = sbr.rel (!%p17_p4) target bundleno = 1 (0x1), region = 93 }

</bundles_post_ra>
